<compile_context>
chip_gen: v7x
topology: tpu7x:2x2x1
jax: 0.10.0
libtpu: 0.0.40
codegen_flags: <defaults>
</compile_context>

<pallas_src>
import jax
import jax.numpy as jnp
from jax import lax
from jax.experimental import pallas as pl
from jax.experimental.pallas import tpu as pltpu

IN_FEATURES = 6000
OUT_FEATURES = 3


def linear_kernel(x_ref, w_ref, b_ref, o_ref):
    # x_ref: [TM, 6000]  w_ref: [3, 6000]  b_ref: [1, 3]  o_ref: [TM, 3]
    # Contract the K axis of x with the K axis of w directly (no transpose):
    # MXU matmul with f32 accumulation; HIGHEST precision keeps f32 accuracy.
    acc = lax.dot_general(
        x_ref[...], w_ref[...],
        dimension_numbers=(((1,), (1,)), ((), ())),
        preferred_element_type=jnp.float32,
        precision=lax.Precision.HIGHEST,
    )                                                   # [TM, 3] f32
    o_ref[...] = (acc + b_ref[...]).astype(o_ref.dtype)


def _vmem_capacity_bytes():
    # Best-effort hardware query; fall back to the smallest (v7x per-TC) VMEM.
    try:
        return int(pltpu.get_tpu_info().vmem_capacity_bytes)
    except Exception:
        return 64 * 1024 * 1024


def _choose_tm(B):
    """Batch tile: ~8 grid steps, rows a multiple of 8, capped per-chip."""
    if B <= 8:
        return B  # single full-extent block (always a legal BlockSpec)
    cap = 1024 if _vmem_capacity_bytes() >= 100 * 1024 * 1024 else 512
    tm = -(-B // 8)                 # ceil(B / 8) -> ~8 grid steps
    tm = ((tm + 7) // 8) * 8        # round up to a multiple of 8 rows
    return max(8, min(tm, cap))


def linear_forward(x, weight, bias):
    """x: [B, 6000] f32, weight: [3, 6000] f32 (PyTorch layout), bias: [3] f32.

    Returns y = x @ weight.T + bias, shape [B, 3].
    """
    B = x.shape[0]
    assert x.shape[1] == IN_FEATURES
    assert weight.shape == (OUT_FEATURES, IN_FEATURES)
    assert bias.shape == (OUT_FEATURES,)

    tm = _choose_tm(B)
    b2d = bias.reshape(1, OUT_FEATURES)
    grid = (pl.cdiv(B, tm),)

    # Double-buffered x tile + headroom; v5e's scoped default is only 16 MiB,
    # and this stays under v7x's 64 MiB physical VMEM (tm is capped at 512
    # there), under v5e/v6e's 128 MiB otherwise.
    vmem_limit = min(100 * 1024 * 1024,
                     max(48 * 1024 * 1024,
                         2 * tm * IN_FEATURES * 4 + 16 * 1024 * 1024))

    return pl.pallas_call(
        linear_kernel,
        out_shape=jax.ShapeDtypeStruct((B, OUT_FEATURES), x.dtype),
        grid=grid,
        in_specs=[
            # x: tiled over batch, full K per block (K == full dim, so the
            # (8,128) divisibility rule is satisfied).
            pl.BlockSpec((tm, IN_FEATURES), lambda i: (i, 0)),
            # weight/bias: full-array blocks, same block every grid step ->
            # resident in VMEM across the whole batch loop.
            pl.BlockSpec((OUT_FEATURES, IN_FEATURES), lambda i: (0, 0)),
            pl.BlockSpec((1, OUT_FEATURES), lambda i: (0, 0)),
        ],
        # [TM, 3] output lowers to masked partial stores; output volume is only
        # B x 12 bytes so the cost is negligible.
        out_specs=pl.BlockSpec((tm, OUT_FEATURES), lambda i: (i, 0)),
        compiler_params=pltpu.CompilerParams(
            dimension_semantics=("parallel",),
            vmem_limit_bytes=int(vmem_limit),
        ),
    )(x, weight, b2d)


def init_params(key):
    # Deterministic init mimicking PyTorch nn.Linear default:
    # U(-1/sqrt(in_features), 1/sqrt(in_features)) for both weight and bias.
    kw, kb = jax.random.split(key)
    bound = 1.0 / jnp.sqrt(jnp.float32(IN_FEATURES))
    weight = jax.random.uniform(
        kw, (OUT_FEATURES, IN_FEATURES), jnp.float32, -bound, bound
    )
    bias = jax.random.uniform(
        kb, (OUT_FEATURES,), jnp.float32, -bound, bound
    )
    return weight, bias


if __name__ == "__main__":
    key = jax.random.PRNGKey(0)
    k_x, k_x2, k_p = jax.random.split(key, 3)

    weight, bias = init_params(k_p)

    # Small test: B=2 (single full block).
    B = 2
    x = jax.random.normal(k_x, (B, IN_FEATURES), jnp.float32)
    y = jax.block_until_ready(linear_forward(x, weight, bias))
    y_ref = x @ weight.T + bias
    assert y.shape == (B, OUT_FEATURES)
    assert jnp.allclose(y, y_ref, atol=2e-4, rtol=2e-4)

    # Ragged-batch test: B=10 -> tm=8, grid of 2 with a partial last tile,
    # exercising the masked store of out-of-range rows.
    B2 = 10
    x2 = jax.random.normal(k_x2, (B2, IN_FEATURES), jnp.float32)
    y2 = jax.block_until_ready(linear_forward(x2, weight, bias))
    y2_ref = x2 @ weight.T + bias
    assert y2.shape == (B2, OUT_FEATURES)
    assert jnp.allclose(y2, y2_ref, atol=2e-4, rtol=2e-4)

    print("KERNEL_OK")
</pallas_src>

<mosaic_0001>
module attributes {stable_mosaic.version = 11 : i64} {
  func.func @linear_kernel(%arg0: i32, %arg1: memref<2x6000xf32, #tpu.memory_space<vmem>>, %arg2: memref<3x6000xf32, #tpu.memory_space<vmem>>, %arg3: memref<1x3xf32, #tpu.memory_space<vmem>>, %arg4: memref<2x3xf32, #tpu.memory_space<vmem>>) attributes {dimension_semantics = [#tpu.dimension_semantics<parallel>], iteration_bounds = array<i64: 1>, scalar_prefetch = 0 : i64, scratch_operands = 0 : i64, tpu.core_type = #tpu.core_type<tc>, window_params = [{transform_indices = @transform_0, window_bounds = array<i64: 2, 6000>}, {pipeline_mode = #tpu.pipeline_mode<synchronous>, transform_indices = @transform_1, window_bounds = array<i64: 3, 6000>}, {pipeline_mode = #tpu.pipeline_mode<synchronous>, transform_indices = @transform_2, window_bounds = array<i64: 1, 3>}, {transform_indices = @transform_3, window_bounds = array<i64: 2, 3>}]} {
    %c0 = arith.constant 0 : index
    %c0_0 = arith.constant 0 : index
    %0 = vector.load %arg1[%c0, %c0_0] : memref<2x6000xf32, #tpu.memory_space<vmem>>, vector<2x6000xf32>
    %c0_1 = arith.constant 0 : index
    %c0_2 = arith.constant 0 : index
    %1 = vector.load %arg2[%c0_1, %c0_2] : memref<3x6000xf32, #tpu.memory_space<vmem>>, vector<3x6000xf32>
    %cst = arith.constant dense<0.000000e+00> : vector<2x3xf32>
    %2 = tpu.matmul %0, %1, %cst {dimension_numbers = #tpu.dot_dimension_numbers<[1], [1], [0], [0], [0, 0, 1, 0], [], []>, precision = #tpu.contract_precision<fp32>} : vector<2x6000xf32>, vector<3x6000xf32>, vector<2x3xf32> -> vector<2x3xf32>
    %c0_3 = arith.constant 0 : index
    %c0_4 = arith.constant 0 : index
    %3 = vector.load %arg3[%c0_3, %c0_4] : memref<1x3xf32, #tpu.memory_space<vmem>>, vector<1x3xf32>
    %4 = vector.broadcast %3 : vector<1x3xf32> to vector<2x3xf32>
    %5 = arith.addf %2, %4 : vector<2x3xf32>
    %c0_5 = arith.constant 0 : index
    %c0_6 = arith.constant 0 : index
    %6 = vector.load %arg4[%c0_5, %c0_6] : memref<2x3xf32, #tpu.memory_space<vmem>>, vector<2x3xf32>
    tpu.vector_store %arg4[%c0_5, %c0_6], %5 {strides = array<i32>} : memref<2x3xf32, #tpu.memory_space<vmem>>, vector<2x3xf32>,
    return
  }
  func.func @transform_0(%arg0: i32) -> (i32, i32) {
    %c0_i32 = arith.constant 0 : i32
    %c0_i32_0 = arith.constant 0 : i32
    return %arg0, %c0_i32 : i32, i32
  }
  func.func @transform_1(%arg0: i32) -> (i32, i32) {
    %c0_i32 = arith.constant 0 : i32
    %c0_i32_0 = arith.constant 0 : i32
    %c0_i32_1 = arith.constant 0 : i32
    return %c0_i32, %c0_i32_0 : i32, i32
  }
  func.func @transform_2(%arg0: i32) -> (i32, i32) {
    %c0_i32 = arith.constant 0 : i32
    %c0_i32_0 = arith.constant 0 : i32
    %c0_i32_1 = arith.constant 0 : i32
    return %c0_i32, %c0_i32_0 : i32, i32
  }
  func.func @transform_3(%arg0: i32) -> (i32, i32) {
    %c0_i32 = arith.constant 0 : i32
    %c0_i32_0 = arith.constant 0 : i32
    return %arg0, %c0_i32 : i32, i32
  }
}

</mosaic_0001>

<bundles_post_ra>
// kernel: tpu_custom_call.1
= control target key start
LH: loop header
LB: loop body
LE: loop exit
PB: predicated region body
PF: predicated region fallthrough
CT: control target
= control target key end

     0   :  { %8 = vsyncpa [#allocation3], 0  ;;  %s13509_s0 = inlined_call_operand.hbm [shape: f32[2,6000], index: 0, kind: input, shape index: {}]   ;;  %s13510_s1 = inlined_call_operand.hbm [shape: f32[3,6000], index: 1, kind: input, shape index: {}]   ;;  %s13511_s2 = inlined_call_operand.vmem [shape: f32[1,3], index: 2, kind: input, shape index: {}]   ;;  %s13512_s3 = inlined_call_operand.hbm [shape: f32[2,3], index: 3, kind: output, shape index: {}]  }
   0x1   :  { %9 = vsyncpa [#allocation6], 0 }
   0x2   :  { %10 = vsyncpa [#allocation4], 0  ;;  %s12180_s12 = smov [#allocation2]   ;;  %s12181_s14 = smov [#allocation5]  }
   0x3   :  { %s17_s13 = sshll.u32 %s12180_s12, 4  ;;  %s27_s15 = sshll.u32 %s12181_s14, 4  ;;  %s18_s13 = int_to_ptr.vmem [resolvable:$true] %s17_s13  ;;  %s28_s15 = int_to_ptr.vmem [resolvable:$true] %s27_s15 }
   0x4   :  { %s12108_s18 = scalar_lea.hbm %s13509_s0, 1504 }
   0x5   :  { %p12109_p0 = scmp.ne.s32.totalorder %s13509_s0, %s12108_s18  ;;  %p12112_p1 = scmp.lt.u32.totalorder %s12108_s18, %s13509_s0 }
   0x7   :  { %p12114_p2 = pnand %p12112_p1, %p12109_p0 }
   0x9   :  { %12117 = shalt.err (!%p12114_p2)
}
   0xa   :  { %s12118_s23 = scalar_lea.vmem %s18_s13, 1504  ;;  %p12123_p4 = scmp.lt.s32.totalorder %s18_s13, %s18_s13 }
   0xb   :  { %p12119_p3 = scmp.ne.s32.totalorder %s18_s13, %s12118_s23  ;;  %p12124_p5 = scmp.lt.s32.totalorder %s12118_s23, %s12118_s23 }
   0xd   :  { %p12125_p6 = por %p12124_p5, %p12123_p4 }
   0xf   :  { %p12126_p7 = pnand %p12125_p6, %p12119_p3 }
  0x11   :  { %12129 = shalt.err (!%p12126_p7)
}
  0x12   :  { %20 = dma.hbm_to_vmem [thread:$0]  %s13509_s0, 1504, %s18_s13, [#allocation3]  }
  0x13   :  { %s12130_s28 = scalar_lea.hbm %s13510_s1, 3008 }
  0x14   :  { %p12131_p8 = scmp.ne.s32.totalorder %s13510_s1, %s12130_s28  ;;  %p12134_p9 = scmp.lt.u32.totalorder %s12130_s28, %s13510_s1 }
  0x16   :  { %p12136_p10 = pnand %p12134_p9, %p12131_p8 }
  0x18   :  { %12139 = shalt.err (!%p12136_p10)
}
  0x19   :  { %s12140_s6 = scalar_lea.vmem %s28_s15, 3008  ;;  %p12145_p12 = scmp.lt.s32.totalorder %s28_s15, %s28_s15 }
  0x1a   :  { %p12141_p11 = scmp.ne.s32.totalorder %s28_s15, %s12140_s6  ;;  %p12146_p13 = scmp.lt.s32.totalorder %s12140_s6, %s12140_s6 }
  0x1c   :  { %p12147_p0 = por %p12146_p13, %p12145_p12 }
  0x1e   :  { %p12148_p1 = pnand %p12147_p0, %p12141_p11 }
  0x20   :  { %12151 = shalt.err (!%p12148_p1)
}
  0x21   :  { %30 = dma.hbm_to_vmem [thread:$0]  %s13510_s1, 3008, %s28_s15, [#allocation6]  }
  0x22   :  { %12174 = dma.done.wait [#allocation3], 1504  }
  0x23   :  { %12175 = vsyncadd [#allocation3], 4294965792 }
  0x24   :  { %12176 = dma.done.wait [#allocation6], 3008  }
  0x25   :  { %12177 = vsyncadd [#allocation6], 4294964288  ;;  %v98_v0 = vlaneseq  ;;  %v12182_v1 = vmov 1983009808   ;;  %v51_v6 = vld [vmem:[#allocation5] sm:$0x77] }
  0x26   :  { %v96_v2 = vunpack.c.l.s4 %v12182_v1  ;;  %v63_v7 = vld [vmem:[#allocation5 + $0x60] sm:$0x77]  ;;  %v367_v9 = vcombine.high %v51_v6, %v51_v6  ;;  %v12234_v10 = vand.u32 4294901760, %v51_v6  ;;  %v12238_v13 = vld [vmem:[#allocation2 + $0x30] sm:$0xff]  ;;  %v52_v59 = vld [vmem:[#allocation5 + $0x8] sm:$0x77] }
  0x27   :  { %v99_v3 = vshrl.u32 %v98_v0, 7  ;;  %v12232_v8 = vld [vmem:[#allocation2] sm:$0xff]  ;;  %v379_v11 = vcombine.high %v63_v7, %v63_v7  ;;  %v12236_v12 = vand.u32 4294901760, %v63_v7  ;;  %v196_v57 = vcombine.high %v12238_v13, %v12238_v13  ;;  %s12185_s9 = smov [#allocation7]  }
  0x28   :  { %v97_v4 = vunpack.c.0.s8 %v96_v2  ;;  %v12244_v16 = vand.u32 4294901760, %v367_v9  ;;  %v12249_v18 = vsub.f32 %v51_v6, %v12234_v10  ;;  %v94_v56 = vcombine.high %v12232_v8, %v12232_v8  ;;  %v64_v61 = vld [vmem:[#allocation5 + $0x68] sm:$0x77]  ;;  %s11728_s10 = sshll.u32 %s12185_s9, 4  ;;  %s11729_s10 = int_to_ptr.vmem [resolvable:$true] %s11728_s10 }
  0x29   :  { %v12246_v17 = vand.u32 4294901760, %v379_v11  ;;  %v12252_v19 = vsub.f32 %v63_v7, %v12236_v12  ;;  %v368_v62 = vcombine.high %v52_v59, %v52_v59  ;;  %v380_v0 = vcombine.high %v64_v61, %v64_v61  ;;  %s12152_s11 = scalar_lea.vmem %s11729_s10, 32  ;;  %p12157_p3 = scmp.lt.s32.totalorder %s11729_s10, %s11729_s10 }
  0x2a   :  { %v12230_v5 = vsub.s32 %v97_v4, %v99_v3  ;;  %419 = vmatprep.subr.mxu1 %v12244_v16  ;;  %v12261_v24 = vsub.f32 %v367_v9, %v12244_v16  ;;  %v508_v25 = vand.u32 4294901760, %v12249_v18  ;;  %vm413_vm0 = vcmask 916480   ;;  %p12153_p2 = scmp.ne.s32.totalorder %s11729_s10, %s12152_s11  ;;  %p12158_p4 = scmp.lt.s32.totalorder %s12152_s11, %s12152_s11 }
  0x2b   :  { %6083 = vmatprep.subr.mxu0 %v12246_v17  ;;  %v12265_v26 = vsub.f32 %v379_v11, %v12246_v17  ;;  %v6172_v27 = vand.u32 4294901760, %v12252_v19  ;;  %421 = vmatpush1.xpose.msra.mxu1 %v12234_v10  ;;  %v12316_v2 = vand.u32 4294901760, %v368_v62  ;;  %v12320_v4 = vand.u32 4294901760, %v380_v0 }
  0x2c   :  { %v101_v14 = vrot.slane %v12232_v8, %v12230_v5  ;;  %v203_v15 = vrot.slane %v12238_v13, %v12230_v5  ;;  %6085 = vmatpush1.xpose.msra.mxu0 %v12236_v12  ;;  %v502_v32 = vand.u32 4294901760, %v12261_v24  ;;  %v509_v39 = vsub.f32 %v12249_v18, %v508_v25  ;;  %p12159_p5 = por %p12158_p4, %p12157_p3 }
  0x2d   :  { %v6166_v33 = vand.u32 4294901760, %v12265_v26  ;;  %v6173_v41 = vsub.f32 %v12252_v19, %v6172_v27  ;;  %v108_v58 = vrot.slane %v94_v56, %v12230_v5  ;;  %v210_v60 = vrot.slane %v196_v57, %v12230_v5 }
  0x2e   :  { %v109_v20 = vcombine.high %v101_v14, %v101_v14  ;;  %v12254_v21 = vand.u32 4294901760, %v101_v14  ;;  %v211_v22 = vcombine.high %v203_v15, %v203_v15  ;;  %v12256_v23 = vand.u32 4294901760, %v203_v15  ;;  %p12160_p6 = pnand %p12159_p5, %p12153_p2 }
  0x2f   :  { %v503_v38 = vsub.f32 %v12261_v24, %v502_v32  ;;  %v6167_v40 = vsub.f32 %v12265_v26, %v6166_v33  ;;  %v510_v54 = vand.u32 4294901760, %v509_v39  ;;  %v6174_v55 = vand.u32 4294901760, %v6173_v41 }
  0x30   :  { %v12270_v28 = vand.u32 4294901760, %v109_v20  ;;  %v12272_v29 = vand.u32 4294901760, %v211_v22  ;;  %v12275_v30 = vsub.f32 %v101_v14, %v12254_v21  ;;  %v12278_v31 = vsub.f32 %v203_v15, %v12256_v23 }
  0x31   :  { %v504_v46 = vand.u32 4294901760, %v503_v38  ;;  %v6168_v47 = vand.u32 4294901760, %v6167_v40  ;;  %v110_v63 = vcombine.high %v108_v58, %v108_v58  ;;  %v212_v1 = vcombine.high %v210_v60, %v210_v60 }
  0x32   :  { %v485_v34 = vsub.f32 %v109_v20, %v12270_v28  ;;  %v6149_v35 = vsub.f32 %v211_v22, %v12272_v29  ;;  %v492_v36 = vand.u32 4294901760, %v12275_v30  ;;  %v6156_v37 = vand.u32 4294901760, %v12278_v31 }
  0x33   :  { %505 = vmatprep.subr.mxu1 %v504_v46  ;;  %6169 = vmatprep.subr.mxu0 %v6168_v47  ;;  %v12318_v3 = vand.u32 4294901760, %v110_v63  ;;  %v12322_v6 = vand.u32 4294901760, %v212_v1  ;;  %v12334_v8 = vsub.f32 %v368_v62, %v12316_v2  ;;  %v12342_v11 = vsub.f32 %v380_v0, %v12320_v4  ;;  %v53_v46 = vld [vmem:[#allocation5 + $0x10] sm:$0x77] }
  0x34   :  { %v486_v42 = vand.u32 4294901760, %v485_v34  ;;  %v6150_v43 = vand.u32 4294901760, %v6149_v35  ;;  %v493_v44 = vsub.f32 %v12275_v30, %v492_v36  ;;  %v6157_v45 = vsub.f32 %v12278_v31, %v6156_v37 }
  0x35   :  { %v12331_v7 = vsub.f32 %v110_v63, %v12318_v3  ;;  %v12339_v9 = vsub.f32 %v212_v1, %v12322_v6  ;;  %v12344_v13 = vand.u32 4294901760, %v108_v58  ;;  %v12346_v14 = vand.u32 4294901760, %v210_v60 }
  0x36   :  { %v487_v48 = vsub.f32 %v485_v34, %v486_v42  ;;  %v6151_v49 = vsub.f32 %v6149_v35, %v6150_v43  ;;  %v494_v50 = vand.u32 4294901760, %v493_v44  ;;  %v6158_v51 = vand.u32 4294901760, %v6157_v45  ;;  %v12414_v44 = vld [vmem:[#allocation2 + $0x38] sm:$0xff] }
  0x37   :  { %v12348_v15 = vand.u32 4294901760, %v52_v59  ;;  %v6638_v20 = vand.u32 4294901760, %v12342_v11  ;;  %v12359_v22 = vsub.f32 %v108_v58, %v12344_v13  ;;  %v220_v47 = vrot.slane %v12414_v44, %v12230_v5 }
  0x38   :  { %v488_v52 = vand.u32 4294901760, %v487_v48  ;;  %v6152_v53 = vand.u32 4294901760, %v6151_v49  ;;  %v65_v48 = vld [vmem:[#allocation5 + $0x70] sm:$0x77]  ;;  %v369_v49 = vcombine.high %v53_v46, %v53_v46  ;;  %v12460_v63 = vand.u32 4294901760, %v53_v46 }
  0x39   :  { %v12458_v62 = vand.u32 4294901760, %v220_v47  ;;  %v12462_v0 = vand.u32 4294901760, %v65_v48  ;;  %vm12184_vm1 = vmmov 0   ;;  %vm11720_vm2 = vcmask 17408  }
  0x3a   :  { %489 = vmatprep.mubr.f32.mxu1 %v488_v52  ;;  %6153 = vmatprep.mubr.f32.mxu0 %v6152_v53  ;;  %v228_v52 = vcombine.high %v220_v47, %v220_v47  ;;  %v12432_v53 = vand.u32 4294901760, %v369_v49 }
  0x3b   :  { %495 = vmatmul.mubr.f32.vlgmr.msra.gmra.mrb[0].mxu1 %v494_v50  ;;  %6159 = vmatmul.mubr.f32.vlgmr.msra.gmra.mrb[0].mxu0 %v6158_v51  ;;  %v381_v51 = vcombine.high %v65_v48, %v65_v48 }
  0x3c   :  { %511 = vmatpush1.xpose.msra.mxu1 %v510_v54  ;;  %6175 = vmatpush1.xpose.msra.mxu0 %v6174_v55  ;;  %v12438_v56 = vand.u32 4294901760, %v228_v52  ;;  %v12446_v58 = vsub.f32 %v369_v49, %v12432_v53 }
  0x3d   :  { %575 = vmatprep.mubr.f32.mxu1 %v12270_v28  ;;  %584 = vmatprep.subr.mxu1 %v12261_v24  ;;  %v12362_v24 = vsub.f32 %v210_v60, %v12346_v14  ;;  %v12436_v55 = vand.u32 4294901760, %v381_v51 }
  0x3e   :  { %6239 = vmatprep.mubr.f32.mxu0 %v12272_v29  ;;  %6248 = vmatprep.subr.mxu0 %v12265_v26 }
  0x3f   :  { %v12454_v60 = vsub.f32 %v381_v51, %v12436_v55 }
  0x43   :  { %577 = vmatmul.mubr.f32.vlgmr.msra.gmra.mrb[0].mxu1 %v12254_v21  ;;  %6241 = vmatmul.mubr.f32.vlgmr.msra.gmra.mrb[0].mxu0 %v12256_v23 }
  0x44   :  { %587 = vmatpush1.xpose.msra.mxu1 %v12249_v18  ;;  %6251 = vmatpush1.xpose.msra.mxu0 %v12252_v19  ;;  %v958_v18 = vand.u32 4294901760, %v12331_v7  ;;  %v974_v19 = vand.u32 4294901760, %v12334_v8 }
  0x45   :  { %652 = vmatprep.mubr.f32.mxu1 %v485_v34  ;;  %661 = vmatprep.subr.mxu1 %v12244_v16 }
  0x46   :  { %6316 = vmatprep.mubr.f32.mxu0 %v6149_v35  ;;  %6325 = vmatprep.subr.mxu0 %v12246_v17 }
  0x4b   :  { %655 = vmatmul.mubr.f32.vlgmr.msra.gmra.mrb[0].mxu1 %v12275_v30  ;;  %6319 = vmatmul.mubr.f32.vlgmr.msra.gmra.mrb[0].mxu0 %v12278_v31  ;;  %v964_v30 = vand.u32 4294901760, %v12359_v22  ;;  %v6628_v31 = vand.u32 4294901760, %v12362_v24 }
  0x4c   :  { %663 = vmatpush1.xpose.msra.mxu1 %v12234_v10  ;;  %6327 = vmatpush1.xpose.msra.mxu0 %v12236_v12 }
  0x4d   :  { %729 = vmatprep.mubr.f32.mxu1 %v486_v42  ;;  %741 = vmatprep.subr.mxu1 %v502_v32  ;;  %v6629_v38 = vsub.f32 %v12362_v24, %v6628_v31 }
  0x4e   :  { %6393 = vmatprep.mubr.f32.mxu0 %v6150_v43  ;;  %6405 = vmatprep.subr.mxu0 %v6166_v33  ;;  %v12412_v43 = vld [vmem:[#allocation2 + $0x8] sm:$0xff] }
  0x4f   :  { %v118_v45 = vrot.slane %v12412_v43, %v12230_v5 }
  0x51   :  { %v126_v50 = vcombine.high %v118_v45, %v118_v45 }
  0x53   :  { %733 = vmatmul.mubr.f32.vlgmr.msra.gmra.mrb[0].mxu1 %v492_v36  ;;  %6397 = vmatmul.mubr.f32.vlgmr.msra.gmra.mrb[0].mxu0 %v6156_v37  ;;  %v965_v37 = vsub.f32 %v12359_v22, %v964_v30  ;;  %v12434_v54 = vand.u32 4294901760, %v126_v50 }
  0x54   :  { %745 = vmatpush1.xpose.msra.mxu1 %v508_v25  ;;  %6409 = vmatpush1.xpose.msra.mxu0 %v6172_v27  ;;  %v12367_v25 = vsub.f32 %v52_v59, %v12348_v15  ;;  %v959_v27 = vsub.f32 %v12331_v7, %v958_v18  ;;  %v12451_v59 = vsub.f32 %v228_v52, %v12438_v56 }
  0x55   :  { %809 = vmatprep.mubr.f32.mxu1 %v12270_v28  ;;  %817 = vmatprep.subr.mxu1 %v12244_v16  ;;  %v12350_v16 = vand.u32 4294901760, %v64_v61  ;;  %v966_v41 = vand.u32 4294901760, %v965_v37  ;;  %v12443_v57 = vsub.f32 %v126_v50, %v12434_v54  ;;  %v66_v37 = vld [vmem:[#allocation5 + $0x78] sm:$0x77] }
  0x56   :  { %6473 = vmatprep.mubr.f32.mxu0 %v12272_v29  ;;  %6481 = vmatprep.subr.mxu0 %v12246_v17  ;;  %v6622_v17 = vand.u32 4294901760, %v12339_v9  ;;  %v980_v32 = vand.u32 4294901760, %v12367_v25  ;;  %v960_v34 = vand.u32 4294901760, %v959_v27  ;;  %v12572_v51 = vand.u32 4294901760, %v66_v37 }
  0x57   :  { %v12370_v26 = vsub.f32 %v64_v61, %v12350_v16  ;;  %v12456_v61 = vand.u32 4294901760, %v118_v45  ;;  %v1430_v1 = vand.u32 4294901760, %v12443_v57 }
  0x58   :  { %v981_v39 = vsub.f32 %v12367_v25, %v980_v32 }
  0x59   :  { %v6644_v33 = vand.u32 4294901760, %v12370_v26 }
  0x5a   :  { %v982_v42 = vand.u32 4294901760, %v981_v39 }
  0x5b   :  { %811 = vmatmul.mubr.f32.vlgmr.msra.gmra.mrb[0].mxu1 %v12254_v21  ;;  %6475 = vmatmul.mubr.f32.vlgmr.msra.gmra.mrb[0].mxu0 %v12256_v23  ;;  %v6645_v40 = vsub.f32 %v12370_v26, %v6644_v33 }
  0x5c   :  { %819 = vmatpush1.xpose.msra.mxu1 %v12234_v10  ;;  %6483 = vmatpush1.xpose.msra.mxu0 %v12236_v12  ;;  %v975_v10 = vsub.f32 %v12334_v8, %v974_v19  ;;  %v6623_v12 = vsub.f32 %v12339_v9, %v6622_v17 }
  0x5d   :  { %883 = vmatprep.mubr.f32.mxu1 %v12270_v28  ;;  %891 = vmatprep.subr.mxu1 %v12316_v2  ;;  %v6639_v28 = vsub.f32 %v12342_v11, %v6638_v20 }
  0x5e   :  { %6547 = vmatprep.mubr.f32.mxu0 %v12272_v29  ;;  %6555 = vmatprep.subr.mxu0 %v12320_v4  ;;  %v976_v29 = vand.u32 4294901760, %v975_v10  ;;  %v6624_v35 = vand.u32 4294901760, %v6623_v12 }
  0x5f   :  { %v6640_v36 = vand.u32 4294901760, %v6639_v28 }
  0x63   :  { %885 = vmatmul.mubr.f32.vlgmr.msra.gmra.mrb[0].mxu1 %v12254_v21  ;;  %6549 = vmatmul.mubr.f32.vlgmr.msra.gmra.mrb[0].mxu0 %v12256_v23  ;;  %v6630_v21 = vand.u32 4294901760, %v6629_v38  ;;  %v6646_v23 = vand.u32 4294901760, %v6645_v40  ;;  %v382_v40 = vcombine.high %v66_v37, %v66_v37 }
  0x64   :  { %893 = vmatpush1.xpose.msra.mxu1 %v12348_v15  ;;  %6557 = vmatpush1.xpose.msra.mxu0 %v12350_v16 }
  0x65   :  { %961 = vmatprep.mubr.f32.mxu1 %v960_v34  ;;  %977 = vmatprep.subr.mxu1 %v976_v29  ;;  %v213_v34 = vcombine.high %v12414_v44, %v12414_v44 }
  0x66   :  { %6625 = vmatprep.mubr.f32.mxu0 %v6624_v35  ;;  %6641 = vmatprep.subr.mxu0 %v6640_v36  ;;  %v54_v35 = vld [vmem:[#allocation5 + $0x18] sm:$0x77] }
  0x67   :  { %v227_v36 = vrot.slane %v213_v34, %v12230_v5  ;;  %v370_v38 = vcombine.high %v54_v35, %v54_v35  ;;  %v12570_v50 = vand.u32 4294901760, %v54_v35 }
  0x69   :  { %v12568_v49 = vand.u32 4294901760, %v227_v36 }
  0x6b   :  { %967 = vmatmul.mubr.f32.vlgmr.msra.gmra.mrb[0].mxu1 %v966_v41  ;;  %6631 = vmatmul.mubr.f32.vlgmr.msra.gmra.mrb[0].mxu0 %v6630_v21  ;;  %v229_v41 = vcombine.high %v227_v36, %v227_v36  ;;  %v12542_v21 = vand.u32 4294901760, %v370_v38 }
  0x6c   :  { %983 = vmatpush1.xpose.msra.mxu1 %v982_v42  ;;  %6647 = vmatpush1.xpose.msra.mxu0 %v6646_v23  ;;  %v12546_v23 = vand.u32 4294901760, %v382_v40 }
  0x6d   :  { %1047 = vmatprep.mubr.f32.mxu1 %v12318_v3  ;;  %1056 = vmatprep.subr.mxu1 %v12334_v8  ;;  %v12471_v8 = vsub.f32 %v118_v45, %v12456_v61  ;;  %v12556_v45 = vsub.f32 %v370_v38, %v12542_v21 }
  0x6e   :  { %6711 = vmatprep.mubr.f32.mxu0 %v12322_v6  ;;  %6720 = vmatprep.subr.mxu0 %v12342_v11  ;;  %v12479_v11 = vsub.f32 %v53_v46, %v12460_v63 }
  0x73   :  { %1049 = vmatmul.mubr.f32.vlgmr.msra.gmra.mrb[0].mxu1 %v12344_v13  ;;  %6713 = vmatmul.mubr.f32.vlgmr.msra.gmra.mrb[0].mxu0 %v12346_v14 }
  0x74   :  { %1059 = vmatpush1.xpose.msra.mxu1 %v12367_v25  ;;  %6723 = vmatpush1.xpose.msra.mxu0 %v12370_v26 }
  0x75   :  { %1124 = vmatprep.mubr.f32.mxu1 %v12331_v7  ;;  %1133 = vmatprep.subr.mxu1 %v12316_v2  ;;  %v7110_v7 = vand.u32 4294901760, %v12454_v60 }
  0x76   :  { %6788 = vmatprep.mubr.f32.mxu0 %v12339_v9  ;;  %6797 = vmatprep.subr.mxu0 %v12320_v4  ;;  %v12474_v9 = vsub.f32 %v220_v47, %v12458_v62  ;;  %v12564_v47 = vsub.f32 %v382_v40, %v12546_v23 }
  0x7b   :  { %1127 = vmatmul.mubr.f32.vlgmr.msra.gmra.mrb[0].mxu1 %v12359_v22  ;;  %6791 = vmatmul.mubr.f32.vlgmr.msra.gmra.mrb[0].mxu0 %v12362_v24  ;;  %v1452_v22 = vand.u32 4294901760, %v12479_v11 }
  0x7c   :  { %1135 = vmatpush1.xpose.msra.mxu1 %v12348_v15  ;;  %6799 = vmatpush1.xpose.msra.mxu0 %v12350_v16 }
  0x7d   :  { %1201 = vmatprep.mubr.f32.mxu1 %v958_v18  ;;  %1213 = vmatprep.subr.mxu1 %v974_v19  ;;  %v12482_v18 = vsub.f32 %v65_v48, %v12462_v0  ;;  %v1431_v19 = vsub.f32 %v12443_v57, %v1430_v1  ;;  %v1453_v28 = vsub.f32 %v12479_v11, %v1452_v22 }
  0x7e   :  { %6865 = vmatprep.mubr.f32.mxu0 %v6622_v17  ;;  %6877 = vmatprep.subr.mxu0 %v6638_v20  ;;  %v1436_v17 = vand.u32 4294901760, %v12471_v8  ;;  %v7100_v20 = vand.u32 4294901760, %v12474_v9 }
  0x7f   :  { %v7116_v24 = vand.u32 4294901760, %v12482_v18  ;;  %v1432_v25 = vand.u32 4294901760, %v1431_v19 }
  0x80   :  { %v1437_v10 = vsub.f32 %v12471_v8, %v1436_v17  ;;  %v7101_v12 = vsub.f32 %v12474_v9, %v7100_v20 }
  0x83   :  { %1205 = vmatmul.mubr.f32.vlgmr.msra.gmra.mrb[0].mxu1 %v964_v30  ;;  %6869 = vmatmul.mubr.f32.vlgmr.msra.gmra.mrb[0].mxu0 %v6628_v31  ;;  %v7117_v30 = vsub.f32 %v12482_v18, %v7116_v24  ;;  %v1438_v31 = vand.u32 4294901760, %v1437_v10  ;;  %v67_v10 = vld [vmem:[#allocation5 + $0x80] sm:$0x77] }
  0x84   :  { %1217 = vmatpush1.xpose.msra.mxu1 %v980_v32  ;;  %6881 = vmatpush1.xpose.msra.mxu0 %v6644_v33  ;;  %v1454_v32 = vand.u32 4294901760, %v1453_v28  ;;  %v111_v33 = vcombine.high %v12412_v43, %v12412_v43  ;;  %v12548_v43 = vand.u32 4294901760, %v229_v41  ;;  %v12684_v40 = vand.u32 4294901760, %v67_v10 }
  0x85   :  { %1281 = vmatprep.mubr.f32.mxu1 %v12318_v3  ;;  %1289 = vmatprep.subr.mxu1 %v12316_v2  ;;  %v1446_v2 = vand.u32 4294901760, %v12446_v58 }
  0x86   :  { %6945 = vmatprep.mubr.f32.mxu0 %v12322_v6  ;;  %6953 = vmatprep.subr.mxu0 %v12320_v4  ;;  %v7094_v4 = vand.u32 4294901760, %v12451_v59  ;;  %v125_v29 = vrot.slane %v111_v33, %v12230_v5  ;;  %v12561_v46 = vsub.f32 %v229_v41, %v12548_v43 }
  0x88   :  { %v127_v39 = vcombine.high %v125_v29, %v125_v29  ;;  %v12566_v48 = vand.u32 4294901760, %v125_v29 }
  0x8a   :  { %v12544_v42 = vand.u32 4294901760, %v127_v39 }
  0x8b   :  { %1283 = vmatmul.mubr.f32.vlgmr.msra.gmra.mrb[0].mxu1 %v12344_v13  ;;  %6947 = vmatmul.mubr.f32.vlgmr.msra.gmra.mrb[0].mxu0 %v12346_v14 }
  0x8c   :  { %1291 = vmatpush1.xpose.msra.mxu1 %v12348_v15  ;;  %6955 = vmatpush1.xpose.msra.mxu0 %v12350_v16  ;;  %v1447_v15 = vsub.f32 %v12446_v58, %v1446_v2  ;;  %v7095_v16 = vsub.f32 %v12451_v59, %v7094_v4  ;;  %v12553_v44 = vsub.f32 %v127_v39, %v12544_v42 }
  0x8d   :  { %1355 = vmatprep.mubr.f32.mxu1 %v12318_v3  ;;  %1363 = vmatprep.subr.mxu1 %v12432_v53  ;;  %v7111_v3 = vsub.f32 %v12454_v60, %v7110_v7 }
  0x8e   :  { %7019 = vmatprep.mubr.f32.mxu0 %v12322_v6  ;;  %7027 = vmatprep.subr.mxu0 %v12436_v55  ;;  %v1448_v6 = vand.u32 4294901760, %v1447_v15  ;;  %v7096_v26 = vand.u32 4294901760, %v7095_v16  ;;  %v1902_v52 = vand.u32 4294901760, %v12553_v44 }
  0x8f   :  { %v7112_v27 = vand.u32 4294901760, %v7111_v3 }
  0x93   :  { %1357 = vmatmul.mubr.f32.vlgmr.msra.gmra.mrb[0].mxu1 %v12344_v13  ;;  %7021 = vmatmul.mubr.f32.vlgmr.msra.gmra.mrb[0].mxu0 %v12346_v14  ;;  %v7102_v13 = vand.u32 4294901760, %v7101_v12  ;;  %v7118_v14 = vand.u32 4294901760, %v7117_v30  ;;  %v383_v30 = vcombine.high %v67_v10, %v67_v10 }
  0x94   :  { %1365 = vmatpush1.xpose.msra.mxu1 %v12460_v63  ;;  %7029 = vmatpush1.xpose.msra.mxu0 %v12462_v0 }
  0x95   :  { %1433 = vmatprep.mubr.f32.mxu1 %v1432_v25  ;;  %1449 = vmatprep.subr.mxu1 %v1448_v6  ;;  %v12636_v25 = vld [vmem:[#allocation2 + $0x40] sm:$0xff] }
  0x96   :  { %7097 = vmatprep.mubr.f32.mxu0 %v7096_v26  ;;  %7113 = vmatprep.subr.mxu0 %v7112_v27  ;;  %v55_v26 = vld [vmem:[#allocation5 + $0x20] sm:$0x77]  ;;  %v237_v27 = vrot.slane %v12636_v25, %v12230_v5 }
  0x97   :  { %v371_v12 = vcombine.high %v55_v26, %v55_v26  ;;  %v12682_v39 = vand.u32 4294901760, %v55_v26 }
  0x98   :  { %v12680_v38 = vand.u32 4294901760, %v237_v27 }
  0x9b   :  { %1439 = vmatmul.mubr.f32.vlgmr.msra.gmra.mrb[0].mxu1 %v1438_v31  ;;  %7103 = vmatmul.mubr.f32.vlgmr.msra.gmra.mrb[0].mxu0 %v7102_v13  ;;  %v245_v31 = vcombine.high %v237_v27, %v237_v27  ;;  %v12654_v13 = vand.u32 4294901760, %v371_v12 }
  0x9c   :  { %1455 = vmatpush1.xpose.msra.mxu1 %v1454_v32  ;;  %7119 = vmatpush1.xpose.msra.mxu0 %v7118_v14  ;;  %v12658_v14 = vand.u32 4294901760, %v383_v30 }
  0x9d   :  { %1519 = vmatprep.mubr.f32.mxu1 %v12434_v54  ;;  %1528 = vmatprep.subr.mxu1 %v12446_v58  ;;  %v12581_v58 = vsub.f32 %v125_v29, %v12566_v48  ;;  %v12660_v33 = vand.u32 4294901760, %v245_v31  ;;  %v12668_v29 = vsub.f32 %v371_v12, %v12654_v13 }
  0x9e   :  { %7183 = vmatprep.mubr.f32.mxu0 %v12438_v56  ;;  %7192 = vmatprep.subr.mxu0 %v12454_v60  ;;  %v12589_v60 = vsub.f32 %v54_v35, %v12570_v50 }
  0x9f   :  { %v12673_v35 = vsub.f32 %v245_v31, %v12660_v33 }
  0xa3   :  { %1521 = vmatmul.mubr.f32.vlgmr.msra.gmra.mrb[0].mxu1 %v12456_v61  ;;  %7185 = vmatmul.mubr.f32.vlgmr.msra.gmra.mrb[0].mxu0 %v12458_v62 }
  0xa4   :  { %1531 = vmatpush1.xpose.msra.mxu1 %v12479_v11  ;;  %7195 = vmatpush1.xpose.msra.mxu0 %v12482_v18 }
  0xa5   :  { %1596 = vmatprep.mubr.f32.mxu1 %v12443_v57  ;;  %1605 = vmatprep.subr.mxu1 %v12432_v53  ;;  %v7582_v57 = vand.u32 4294901760, %v12564_v47 }
  0xa6   :  { %7260 = vmatprep.mubr.f32.mxu0 %v12451_v59  ;;  %7269 = vmatprep.subr.mxu0 %v12436_v55  ;;  %v12584_v59 = vsub.f32 %v227_v36, %v12568_v49  ;;  %v12676_v36 = vsub.f32 %v383_v30, %v12658_v14 }
  0xab   :  { %1599 = vmatmul.mubr.f32.vlgmr.msra.gmra.mrb[0].mxu1 %v12471_v8  ;;  %7263 = vmatmul.mubr.f32.vlgmr.msra.gmra.mrb[0].mxu0 %v12474_v9  ;;  %v1924_v8 = vand.u32 4294901760, %v12589_v60 }
  0xac   :  { %1607 = vmatpush1.xpose.msra.mxu1 %v12460_v63  ;;  %7271 = vmatpush1.xpose.msra.mxu0 %v12462_v0 }
  0xad   :  { %1673 = vmatprep.mubr.f32.mxu1 %v1430_v1  ;;  %1685 = vmatprep.subr.mxu1 %v1446_v2  ;;  %v12592_v1 = vsub.f32 %v66_v37, %v12572_v51  ;;  %v1903_v2 = vsub.f32 %v12553_v44, %v1902_v52  ;;  %v1925_v3 = vsub.f32 %v12589_v60, %v1924_v8 }
  0xae   :  { %7337 = vmatprep.mubr.f32.mxu0 %v7094_v4  ;;  %7349 = vmatprep.subr.mxu0 %v7110_v7  ;;  %v1908_v4 = vand.u32 4294901760, %v12581_v58  ;;  %v7572_v7 = vand.u32 4294901760, %v12584_v59 }
  0xaf   :  { %v7588_v9 = vand.u32 4294901760, %v12592_v1  ;;  %v1904_v11 = vand.u32 4294901760, %v1903_v2 }
  0xb0   :  { %v1909_v15 = vsub.f32 %v12581_v58, %v1908_v4  ;;  %v7573_v16 = vsub.f32 %v12584_v59, %v7572_v7 }
  0xb3   :  { %1677 = vmatmul.mubr.f32.vlgmr.msra.gmra.mrb[0].mxu1 %v1436_v17  ;;  %7341 = vmatmul.mubr.f32.vlgmr.msra.gmra.mrb[0].mxu0 %v7100_v20  ;;  %v7589_v17 = vsub.f32 %v12592_v1, %v7588_v9  ;;  %v1910_v20 = vand.u32 4294901760, %v1909_v15  ;;  %v68_v15 = vld [vmem:[#allocation5 + $0x88] sm:$0x77] }
  0xb4   :  { %1689 = vmatpush1.xpose.msra.mxu1 %v1452_v22  ;;  %7353 = vmatpush1.xpose.msra.mxu0 %v7116_v24  ;;  %v1926_v22 = vand.u32 4294901760, %v1925_v3  ;;  %v12634_v24 = vld [vmem:[#allocation2 + $0x10] sm:$0xff]  ;;  %v12794_v30 = vand.u32 4294901760, %v68_v15 }
  0xb5   :  { %1753 = vmatprep.mubr.f32.mxu1 %v12434_v54  ;;  %1761 = vmatprep.subr.mxu1 %v12432_v53  ;;  %v1918_v53 = vand.u32 4294901760, %v12556_v45  ;;  %v135_v6 = vrot.slane %v12634_v24, %v12230_v5 }
  0xb6   :  { %7417 = vmatprep.mubr.f32.mxu0 %v12438_v56  ;;  %7425 = vmatprep.subr.mxu0 %v12436_v55  ;;  %v7566_v55 = vand.u32 4294901760, %v12561_v46 }
  0xb7   :  { %v143_v28 = vcombine.high %v135_v6, %v135_v6  ;;  %v12678_v37 = vand.u32 4294901760, %v135_v6 }
  0xb9   :  { %v12656_v32 = vand.u32 4294901760, %v143_v28 }
  0xbb   :  { %1755 = vmatmul.mubr.f32.vlgmr.msra.gmra.mrb[0].mxu1 %v12456_v61  ;;  %7419 = vmatmul.mubr.f32.vlgmr.msra.gmra.mrb[0].mxu0 %v12458_v62  ;;  %v12665_v34 = vsub.f32 %v143_v28, %v12656_v32 }
  0xbc   :  { %1763 = vmatpush1.xpose.msra.mxu1 %v12460_v63  ;;  %7427 = vmatpush1.xpose.msra.mxu0 %v12462_v0  ;;  %v1919_v63 = vsub.f32 %v12556_v45, %v1918_v53  ;;  %v7567_v0 = vsub.f32 %v12561_v46, %v7566_v55 }
  0xbd   :  { %1827 = vmatprep.mubr.f32.mxu1 %v12434_v54  ;;  %1835 = vmatprep.subr.mxu1 %v12542_v21  ;;  %v7583_v54 = vsub.f32 %v12564_v47, %v7582_v57  ;;  %v2374_v41 = vand.u32 4294901760, %v12665_v34 }
  0xbe   :  { %7491 = vmatprep.mubr.f32.mxu0 %v12438_v56  ;;  %7499 = vmatprep.subr.mxu0 %v12546_v23  ;;  %v1920_v56 = vand.u32 4294901760, %v1919_v63  ;;  %v7568_v18 = vand.u32 4294901760, %v7567_v0 }
  0xbf   :  { %v7584_v19 = vand.u32 4294901760, %v7583_v54 }
  0xc3   :  { %1829 = vmatmul.mubr.f32.vlgmr.msra.gmra.mrb[0].mxu1 %v12456_v61  ;;  %7493 = vmatmul.mubr.f32.vlgmr.msra.gmra.mrb[0].mxu0 %v12458_v62  ;;  %v7574_v61 = vand.u32 4294901760, %v7573_v16  ;;  %v7590_v62 = vand.u32 4294901760, %v7589_v17  ;;  %v384_v17 = vcombine.high %v68_v15, %v68_v15 }
  0xc4   :  { %1837 = vmatpush1.xpose.msra.mxu1 %v12570_v50  ;;  %7501 = vmatpush1.xpose.msra.mxu0 %v12572_v51 }
  0xc5   :  { %1905 = vmatprep.mubr.f32.mxu1 %v1904_v11  ;;  %1921 = vmatprep.subr.mxu1 %v1920_v56  ;;  %v230_v11 = vcombine.high %v12636_v25, %v12636_v25 }
  0xc6   :  { %7569 = vmatprep.mubr.f32.mxu0 %v7568_v18  ;;  %7585 = vmatprep.subr.mxu0 %v7584_v19  ;;  %v56_v18 = vld [vmem:[#allocation5 + $0x28] sm:$0x77] }
  0xc7   :  { %v244_v19 = vrot.slane %v230_v11, %v12230_v5  ;;  %v372_v16 = vcombine.high %v56_v18, %v56_v18  ;;  %v12792_v28 = vand.u32 4294901760, %v56_v18 }
  0xc9   :  { %v12790_v12 = vand.u32 4294901760, %v244_v19 }
  0xcb   :  { %1911 = vmatmul.mubr.f32.vlgmr.msra.gmra.mrb[0].mxu1 %v1910_v20  ;;  %7575 = vmatmul.mubr.f32.vlgmr.msra.gmra.mrb[0].mxu0 %v7574_v61  ;;  %v246_v20 = vcombine.high %v244_v19, %v244_v19  ;;  %v12764_v61 = vand.u32 4294901760, %v372_v16 }
  0xcc   :  { %1927 = vmatpush1.xpose.msra.mxu1 %v1926_v22  ;;  %7591 = vmatpush1.xpose.msra.mxu0 %v7590_v62  ;;  %v12768_v62 = vand.u32 4294901760, %v384_v17 }
  0xcd   :  { %1991 = vmatprep.mubr.f32.mxu1 %v12544_v42  ;;  %2000 = vmatprep.subr.mxu1 %v12556_v45  ;;  %v12693_v45 = vsub.f32 %v135_v6, %v12678_v37  ;;  %v12778_v6 = vsub.f32 %v372_v16, %v12764_v61 }
  0xce   :  { %7655 = vmatprep.mubr.f32.mxu0 %v12548_v43  ;;  %7664 = vmatprep.subr.mxu0 %v12564_v47  ;;  %v12701_v47 = vsub.f32 %v55_v26, %v12682_v39 }
  0xd3   :  { %1993 = vmatmul.mubr.f32.vlgmr.msra.gmra.mrb[0].mxu1 %v12566_v48  ;;  %7657 = vmatmul.mubr.f32.vlgmr.msra.gmra.mrb[0].mxu0 %v12568_v49 }
  0xd4   :  { %2003 = vmatpush1.xpose.msra.mxu1 %v12589_v60  ;;  %7667 = vmatpush1.xpose.msra.mxu0 %v12592_v1 }
  0xd5   :  { %2068 = vmatprep.mubr.f32.mxu1 %v12553_v44  ;;  %2077 = vmatprep.subr.mxu1 %v12542_v21  ;;  %v8054_v44 = vand.u32 4294901760, %v12676_v36 }
  0xd6   :  { %7732 = vmatprep.mubr.f32.mxu0 %v12561_v46  ;;  %7741 = vmatprep.subr.mxu0 %v12546_v23  ;;  %v12696_v46 = vsub.f32 %v237_v27, %v12680_v38  ;;  %v12786_v27 = vsub.f32 %v384_v17, %v12768_v62 }
  0xdb   :  { %2071 = vmatmul.mubr.f32.vlgmr.msra.gmra.mrb[0].mxu1 %v12581_v58  ;;  %7735 = vmatmul.mubr.f32.vlgmr.msra.gmra.mrb[0].mxu0 %v12584_v59  ;;  %v2396_v58 = vand.u32 4294901760, %v12701_v47 }
  0xdc   :  { %2079 = vmatpush1.xpose.msra.mxu1 %v12570_v50  ;;  %7743 = vmatpush1.xpose.msra.mxu0 %v12572_v51 }
  0xdd   :  { %2145 = vmatprep.mubr.f32.mxu1 %v1902_v52  ;;  %2157 = vmatprep.subr.mxu1 %v1918_v53  ;;  %v12704_v52 = vsub.f32 %v67_v10, %v12684_v40  ;;  %v2375_v53 = vsub.f32 %v12665_v34, %v2374_v41  ;;  %v2397_v54 = vsub.f32 %v12701_v47, %v2396_v58 }
  0xde   :  { %7809 = vmatprep.mubr.f32.mxu0 %v7566_v55  ;;  %7821 = vmatprep.subr.mxu0 %v7582_v57  ;;  %v2380_v55 = vand.u32 4294901760, %v12693_v45  ;;  %v8044_v57 = vand.u32 4294901760, %v12696_v46 }
  0xdf   :  { %v8060_v59 = vand.u32 4294901760, %v12704_v52  ;;  %v2376_v60 = vand.u32 4294901760, %v2375_v53 }
  0xe0   :  { %v2381_v63 = vsub.f32 %v12693_v45, %v2380_v55  ;;  %v8045_v0 = vsub.f32 %v12696_v46, %v8044_v57 }
  0xe3   :  { %2149 = vmatmul.mubr.f32.vlgmr.msra.gmra.mrb[0].mxu1 %v1908_v4  ;;  %7813 = vmatmul.mubr.f32.vlgmr.msra.gmra.mrb[0].mxu0 %v7572_v7  ;;  %v8061_v4 = vsub.f32 %v12704_v52, %v8060_v59  ;;  %v2382_v7 = vand.u32 4294901760, %v2381_v63  ;;  %v69_v63 = vld [vmem:[#allocation5 + $0x90] sm:$0x77] }
  0xe4   :  { %2161 = vmatpush1.xpose.msra.mxu1 %v1924_v8  ;;  %7825 = vmatpush1.xpose.msra.mxu0 %v7588_v9  ;;  %v2398_v8 = vand.u32 4294901760, %v2397_v54  ;;  %v128_v9 = vcombine.high %v12634_v24, %v12634_v24  ;;  %v12770_v24 = vand.u32 4294901760, %v246_v20  ;;  %v12906_v17 = vand.u32 4294901760, %v69_v63 }
  0xe5   :  { %2225 = vmatprep.mubr.f32.mxu1 %v12544_v42  ;;  %2233 = vmatprep.subr.mxu1 %v12542_v21  ;;  %v2390_v21 = vand.u32 4294901760, %v12668_v29 }
  0xe6   :  { %7889 = vmatprep.mubr.f32.mxu0 %v12548_v43  ;;  %7897 = vmatprep.subr.mxu0 %v12546_v23  ;;  %v8038_v23 = vand.u32 4294901760, %v12673_v35  ;;  %v142_v56 = vrot.slane %v128_v9, %v12230_v5  ;;  %v12783_v26 = vsub.f32 %v246_v20, %v12770_v24 }
  0xe8   :  { %v144_v3 = vcombine.high %v142_v56, %v142_v56  ;;  %v12788_v10 = vand.u32 4294901760, %v142_v56 }
  0xea   :  { %v12766_v22 = vand.u32 4294901760, %v144_v3 }
  0xeb   :  { %2227 = vmatmul.mubr.f32.vlgmr.msra.gmra.mrb[0].mxu1 %v12566_v48  ;;  %7891 = vmatmul.mubr.f32.vlgmr.msra.gmra.mrb[0].mxu0 %v12568_v49 }
  0xec   :  { %2235 = vmatpush1.xpose.msra.mxu1 %v12570_v50  ;;  %7899 = vmatpush1.xpose.msra.mxu0 %v12572_v51  ;;  %v2391_v50 = vsub.f32 %v12668_v29, %v2390_v21  ;;  %v8039_v51 = vsub.f32 %v12673_v35, %v8038_v23  ;;  %v12775_v25 = vsub.f32 %v144_v3, %v12766_v22 }
  0xed   :  { %2299 = vmatprep.mubr.f32.mxu1 %v12544_v42  ;;  %2307 = vmatprep.subr.mxu1 %v12654_v13  ;;  %v8055_v42 = vsub.f32 %v12676_v36, %v8054_v44 }
  0xee   :  { %7963 = vmatprep.mubr.f32.mxu0 %v12548_v43  ;;  %7971 = vmatprep.subr.mxu0 %v12658_v14  ;;  %v2392_v43 = vand.u32 4294901760, %v2391_v50  ;;  %v8040_v1 = vand.u32 4294901760, %v8039_v51  ;;  %v2846_v31 = vand.u32 4294901760, %v12775_v25 }
  0xef   :  { %v8056_v2 = vand.u32 4294901760, %v8055_v42 }
  0xf3   :  { %2301 = vmatmul.mubr.f32.vlgmr.msra.gmra.mrb[0].mxu1 %v12566_v48  ;;  %7965 = vmatmul.mubr.f32.vlgmr.msra.gmra.mrb[0].mxu0 %v12568_v49  ;;  %v8046_v48 = vand.u32 4294901760, %v8045_v0  ;;  %v8062_v49 = vand.u32 4294901760, %v8061_v4  ;;  %v385_v4 = vcombine.high %v69_v63, %v69_v63 }
  0xf4   :  { %2309 = vmatpush1.xpose.msra.mxu1 %v12682_v39  ;;  %7973 = vmatpush1.xpose.msra.mxu0 %v12684_v40 }
  0xf5   :  { %2377 = vmatprep.mubr.f32.mxu1 %v2376_v60  ;;  %2393 = vmatprep.subr.mxu1 %v2392_v43  ;;  %v12858_v60 = vld [vmem:[#allocation2 + $0x48] sm:$0xff] }
  0xf6   :  { %8041 = vmatprep.mubr.f32.mxu0 %v8040_v1  ;;  %8057 = vmatprep.subr.mxu0 %v8056_v2  ;;  %v57_v1 = vld [vmem:[#allocation5 + $0x30] sm:$0x77]  ;;  %v254_v2 = vrot.slane %v12858_v60, %v12230_v5 }
  0xf7   :  { %v373_v0 = vcombine.high %v57_v1, %v57_v1  ;;  %v12904_v3 = vand.u32 4294901760, %v57_v1 }
  0xf8   :  { %v12902_v16 = vand.u32 4294901760, %v254_v2 }
  0xfb   :  { %2383 = vmatmul.mubr.f32.vlgmr.msra.gmra.mrb[0].mxu1 %v2382_v7  ;;  %8047 = vmatmul.mubr.f32.vlgmr.msra.gmra.mrb[0].mxu0 %v8046_v48  ;;  %v262_v7 = vcombine.high %v254_v2, %v254_v2  ;;  %v12876_v48 = vand.u32 4294901760, %v373_v0 }
  0xfc   :  { %2399 = vmatpush1.xpose.msra.mxu1 %v2398_v8  ;;  %8063 = vmatpush1.xpose.msra.mxu0 %v8062_v49  ;;  %v12880_v49 = vand.u32 4294901760, %v385_v4 }
  0xfd   :  { %2463 = vmatprep.mubr.f32.mxu1 %v12656_v32  ;;  %2472 = vmatprep.subr.mxu1 %v12668_v29  ;;  %v12803_v29 = vsub.f32 %v142_v56, %v12788_v10  ;;  %v12882_v9 = vand.u32 4294901760, %v262_v7  ;;  %v12890_v56 = vsub.f32 %v373_v0, %v12876_v48 }
  0xfe   :  { %8127 = vmatprep.mubr.f32.mxu0 %v12660_v33  ;;  %8136 = vmatprep.subr.mxu0 %v12676_v36  ;;  %v12811_v36 = vsub.f32 %v56_v18, %v12792_v28 }
  0xff   :  { %v12895_v18 = vsub.f32 %v262_v7, %v12882_v9 }
 0x103   :  { %2465 = vmatmul.mubr.f32.vlgmr.msra.gmra.mrb[0].mxu1 %v12678_v37  ;;  %8129 = vmatmul.mubr.f32.vlgmr.msra.gmra.mrb[0].mxu0 %v12680_v38 }
 0x104   :  { %2475 = vmatpush1.xpose.msra.mxu1 %v12701_v47  ;;  %8139 = vmatpush1.xpose.msra.mxu0 %v12704_v52 }
 0x105   :  { %2540 = vmatprep.mubr.f32.mxu1 %v12665_v34  ;;  %2549 = vmatprep.subr.mxu1 %v12654_v13  ;;  %v8526_v34 = vand.u32 4294901760, %v12786_v27 }
 0x106   :  { %8204 = vmatprep.mubr.f32.mxu0 %v12673_v35  ;;  %8213 = vmatprep.subr.mxu0 %v12658_v14  ;;  %v12806_v35 = vsub.f32 %v244_v19, %v12790_v12  ;;  %v12898_v19 = vsub.f32 %v385_v4, %v12880_v49 }
 0x10b   :  { %2543 = vmatmul.mubr.f32.vlgmr.msra.gmra.mrb[0].mxu1 %v12693_v45  ;;  %8207 = vmatmul.mubr.f32.vlgmr.msra.gmra.mrb[0].mxu0 %v12696_v46  ;;  %v2868_v45 = vand.u32 4294901760, %v12811_v36 }
 0x10c   :  { %2551 = vmatpush1.xpose.msra.mxu1 %v12682_v39  ;;  %8215 = vmatpush1.xpose.msra.mxu0 %v12684_v40 }
 0x10d   :  { %2617 = vmatprep.mubr.f32.mxu1 %v2374_v41  ;;  %2629 = vmatprep.subr.mxu1 %v2390_v21  ;;  %v12814_v41 = vsub.f32 %v68_v15, %v12794_v30  ;;  %v2847_v21 = vsub.f32 %v12775_v25, %v2846_v31  ;;  %v2869_v42 = vsub.f32 %v12811_v36, %v2868_v45 }
 0x10e   :  { %8281 = vmatprep.mubr.f32.mxu0 %v8038_v23  ;;  %8293 = vmatprep.subr.mxu0 %v8054_v44  ;;  %v2852_v23 = vand.u32 4294901760, %v12803_v29  ;;  %v8516_v44 = vand.u32 4294901760, %v12806_v35 }
 0x10f   :  { %v8532_v46 = vand.u32 4294901760, %v12814_v41  ;;  %v2848_v47 = vand.u32 4294901760, %v2847_v21 }
 0x110   :  { %v2853_v50 = vsub.f32 %v12803_v29, %v2852_v23  ;;  %v8517_v51 = vsub.f32 %v12806_v35, %v8516_v44 }
 0x113   :  { %2621 = vmatmul.mubr.f32.vlgmr.msra.gmra.mrb[0].mxu1 %v2380_v55  ;;  %8285 = vmatmul.mubr.f32.vlgmr.msra.gmra.mrb[0].mxu0 %v8044_v57  ;;  %v8533_v55 = vsub.f32 %v12814_v41, %v8532_v46  ;;  %v2854_v57 = vand.u32 4294901760, %v2853_v50  ;;  %v70_v50 = vld [vmem:[#allocation5 + $0x98] sm:$0x77] }
 0x114   :  { %2633 = vmatpush1.xpose.msra.mxu1 %v2396_v58  ;;  %8297 = vmatpush1.xpose.msra.mxu0 %v8060_v59  ;;  %v2870_v58 = vand.u32 4294901760, %v2869_v42  ;;  %v12856_v59 = vld [vmem:[#allocation2 + $0x18] sm:$0xff]  ;;  %v13016_v4 = vand.u32 4294901760, %v70_v50 }
 0x115   :  { %2697 = vmatprep.mubr.f32.mxu1 %v12656_v32  ;;  %2705 = vmatprep.subr.mxu1 %v12654_v13  ;;  %v2862_v13 = vand.u32 4294901760, %v12778_v6  ;;  %v152_v43 = vrot.slane %v12856_v59, %v12230_v5 }
 0x116   :  { %8361 = vmatprep.mubr.f32.mxu0 %v12660_v33  ;;  %8369 = vmatprep.subr.mxu0 %v12658_v14  ;;  %v8510_v14 = vand.u32 4294901760, %v12783_v26 }
 0x117   :  { %v160_v54 = vcombine.high %v152_v43, %v152_v43  ;;  %v12900_v15 = vand.u32 4294901760, %v152_v43 }
 0x119   :  { %v12878_v8 = vand.u32 4294901760, %v160_v54 }
 0x11b   :  { %2699 = vmatmul.mubr.f32.vlgmr.msra.gmra.mrb[0].mxu1 %v12678_v37  ;;  %8363 = vmatmul.mubr.f32.vlgmr.msra.gmra.mrb[0].mxu0 %v12680_v38  ;;  %v12887_v11 = vsub.f32 %v160_v54, %v12878_v8 }
 0x11c   :  { %2707 = vmatpush1.xpose.msra.mxu1 %v12682_v39  ;;  %8371 = vmatpush1.xpose.msra.mxu0 %v12684_v40  ;;  %v2863_v39 = vsub.f32 %v12778_v6, %v2862_v13  ;;  %v8511_v40 = vsub.f32 %v12783_v26, %v8510_v14 }
 0x11d   :  { %2771 = vmatprep.mubr.f32.mxu1 %v12656_v32  ;;  %2779 = vmatprep.subr.mxu1 %v12764_v61  ;;  %v8527_v32 = vsub.f32 %v12786_v27, %v8526_v34  ;;  %v3318_v20 = vand.u32 4294901760, %v12887_v11 }
 0x11e   :  { %8435 = vmatprep.mubr.f32.mxu0 %v12660_v33  ;;  %8443 = vmatprep.subr.mxu0 %v12768_v62  ;;  %v2864_v33 = vand.u32 4294901760, %v2863_v39  ;;  %v8512_v52 = vand.u32 4294901760, %v8511_v40 }
 0x11f   :  { %v8528_v53 = vand.u32 4294901760, %v8527_v32 }
 0x123   :  { %2773 = vmatmul.mubr.f32.vlgmr.msra.gmra.mrb[0].mxu1 %v12678_v37  ;;  %8437 = vmatmul.mubr.f32.vlgmr.msra.gmra.mrb[0].mxu0 %v12680_v38  ;;  %v8518_v37 = vand.u32 4294901760, %v8517_v51  ;;  %v8534_v38 = vand.u32 4294901760, %v8533_v55  ;;  %v386_v55 = vcombine.high %v70_v50, %v70_v50 }
 0x124   :  { %2781 = vmatpush1.xpose.msra.mxu1 %v12792_v28  ;;  %8445 = vmatpush1.xpose.msra.mxu0 %v12794_v30 }
 0x125   :  { %2849 = vmatprep.mubr.f32.mxu1 %v2848_v47  ;;  %2865 = vmatprep.subr.mxu1 %v2864_v33  ;;  %v247_v47 = vcombine.high %v12858_v60, %v12858_v60 }
 0x126   :  { %8513 = vmatprep.mubr.f32.mxu0 %v8512_v52  ;;  %8529 = vmatprep.subr.mxu0 %v8528_v53  ;;  %v58_v52 = vld [vmem:[#allocation5 + $0x38] sm:$0x77] }
 0x127   :  { %v261_v53 = vrot.slane %v247_v47, %v12230_v5  ;;  %v374_v51 = vcombine.high %v58_v52, %v58_v52  ;;  %v13014_v54 = vand.u32 4294901760, %v58_v52 }
 0x129   :  { %v13012_v0 = vand.u32 4294901760, %v261_v53 }
 0x12b   :  { %2855 = vmatmul.mubr.f32.vlgmr.msra.gmra.mrb[0].mxu1 %v2854_v57  ;;  %8519 = vmatmul.mubr.f32.vlgmr.msra.gmra.mrb[0].mxu0 %v8518_v37  ;;  %v263_v57 = vcombine.high %v261_v53, %v261_v53  ;;  %v12986_v37 = vand.u32 4294901760, %v374_v51 }
 0x12c   :  { %2871 = vmatpush1.xpose.msra.mxu1 %v2870_v58  ;;  %8535 = vmatpush1.xpose.msra.mxu0 %v8534_v38  ;;  %v12990_v38 = vand.u32 4294901760, %v386_v55 }
 0x12d   :  { %2935 = vmatprep.mubr.f32.mxu1 %v12766_v22  ;;  %2944 = vmatprep.subr.mxu1 %v12778_v6  ;;  %v12915_v6 = vsub.f32 %v152_v43, %v12900_v15  ;;  %v13000_v43 = vsub.f32 %v374_v51, %v12986_v37 }
 0x12e   :  { %8599 = vmatprep.mubr.f32.mxu0 %v12770_v24  ;;  %8608 = vmatprep.subr.mxu0 %v12786_v27  ;;  %v12923_v27 = vsub.f32 %v57_v1, %v12904_v3 }
 0x133   :  { %2937 = vmatmul.mubr.f32.vlgmr.msra.gmra.mrb[0].mxu1 %v12788_v10  ;;  %8601 = vmatmul.mubr.f32.vlgmr.msra.gmra.mrb[0].mxu0 %v12790_v12 }
 0x134   :  { %2947 = vmatpush1.xpose.msra.mxu1 %v12811_v36  ;;  %8611 = vmatpush1.xpose.msra.mxu0 %v12814_v41 }
 0x135   :  { %3012 = vmatprep.mubr.f32.mxu1 %v12775_v25  ;;  %3021 = vmatprep.subr.mxu1 %v12764_v61  ;;  %v8998_v25 = vand.u32 4294901760, %v12898_v19 }
 0x136   :  { %8676 = vmatprep.mubr.f32.mxu0 %v12783_v26  ;;  %8685 = vmatprep.subr.mxu0 %v12768_v62  ;;  %v12918_v26 = vsub.f32 %v254_v2, %v12902_v16  ;;  %v13008_v2 = vsub.f32 %v386_v55, %v12990_v38 }
 0x13b   :  { %3015 = vmatmul.mubr.f32.vlgmr.msra.gmra.mrb[0].mxu1 %v12803_v29  ;;  %8679 = vmatmul.mubr.f32.vlgmr.msra.gmra.mrb[0].mxu0 %v12806_v35  ;;  %v3340_v29 = vand.u32 4294901760, %v12923_v27 }
 0x13c   :  { %3023 = vmatpush1.xpose.msra.mxu1 %v12792_v28  ;;  %8687 = vmatpush1.xpose.msra.mxu0 %v12794_v30 }
 0x13d   :  { %3089 = vmatprep.mubr.f32.mxu1 %v2846_v31  ;;  %3101 = vmatprep.subr.mxu1 %v2862_v13  ;;  %v12926_v31 = vsub.f32 %v69_v63, %v12906_v17  ;;  %v3319_v13 = vsub.f32 %v12887_v11, %v3318_v20  ;;  %v3341_v32 = vsub.f32 %v12923_v27, %v3340_v29 }
 0x13e   :  { %8753 = vmatprep.mubr.f32.mxu0 %v8510_v14  ;;  %8765 = vmatprep.subr.mxu0 %v8526_v34  ;;  %v3324_v14 = vand.u32 4294901760, %v12915_v6  ;;  %v8988_v34 = vand.u32 4294901760, %v12918_v26 }
 0x13f   :  { %v9004_v35 = vand.u32 4294901760, %v12926_v31  ;;  %v3320_v36 = vand.u32 4294901760, %v3319_v13 }
 0x140   :  { %v3325_v39 = vsub.f32 %v12915_v6, %v3324_v14  ;;  %v8989_v40 = vsub.f32 %v12918_v26, %v8988_v34 }
 0x143   :  { %3093 = vmatmul.mubr.f32.vlgmr.msra.gmra.mrb[0].mxu1 %v2852_v23  ;;  %8757 = vmatmul.mubr.f32.vlgmr.msra.gmra.mrb[0].mxu0 %v8516_v44  ;;  %v9005_v23 = vsub.f32 %v12926_v31, %v9004_v35  ;;  %v3326_v44 = vand.u32 4294901760, %v3325_v39  ;;  %v71_v39 = vld [vmem:[#allocation5 + $0xa0] sm:$0x77] }
 0x144   :  { %3105 = vmatpush1.xpose.msra.mxu1 %v2868_v45  ;;  %8769 = vmatpush1.xpose.msra.mxu0 %v8532_v46  ;;  %v3342_v45 = vand.u32 4294901760, %v3341_v32  ;;  %v145_v46 = vcombine.high %v12856_v59, %v12856_v59  ;;  %v12992_v59 = vand.u32 4294901760, %v263_v57  ;;  %v13128_v55 = vand.u32 4294901760, %v71_v39 }
 0x145   :  { %3169 = vmatprep.mubr.f32.mxu1 %v12766_v22  ;;  %3177 = vmatprep.subr.mxu1 %v12764_v61  ;;  %v3334_v61 = vand.u32 4294901760, %v12890_v56 }
 0x146   :  { %8833 = vmatprep.mubr.f32.mxu0 %v12770_v24  ;;  %8841 = vmatprep.subr.mxu0 %v12768_v62  ;;  %v8982_v62 = vand.u32 4294901760, %v12895_v18  ;;  %v159_v33 = vrot.slane %v145_v46, %v12230_v5  ;;  %v13005_v1 = vsub.f32 %v263_v57, %v12992_v59 }
 0x148   :  { %v161_v42 = vcombine.high %v159_v33, %v159_v33  ;;  %v13010_v63 = vand.u32 4294901760, %v159_v33 }
 0x14a   :  { %v12988_v58 = vand.u32 4294901760, %v161_v42 }
 0x14b   :  { %3171 = vmatmul.mubr.f32.vlgmr.msra.gmra.mrb[0].mxu1 %v12788_v10  ;;  %8835 = vmatmul.mubr.f32.vlgmr.msra.gmra.mrb[0].mxu0 %v12790_v12 }
 0x14c   :  { %3179 = vmatpush1.xpose.msra.mxu1 %v12792_v28  ;;  %8843 = vmatpush1.xpose.msra.mxu0 %v12794_v30  ;;  %v3335_v28 = vsub.f32 %v12890_v56, %v3334_v61  ;;  %v8983_v30 = vsub.f32 %v12895_v18, %v8982_v62  ;;  %v12997_v60 = vsub.f32 %v161_v42, %v12988_v58 }
 0x14d   :  { %3243 = vmatprep.mubr.f32.mxu1 %v12766_v22  ;;  %3251 = vmatprep.subr.mxu1 %v12876_v48  ;;  %v8999_v22 = vsub.f32 %v12898_v19, %v8998_v25 }
 0x14e   :  { %8907 = vmatprep.mubr.f32.mxu0 %v12770_v24  ;;  %8915 = vmatprep.subr.mxu0 %v12880_v49  ;;  %v3336_v24 = vand.u32 4294901760, %v3335_v28  ;;  %v8984_v41 = vand.u32 4294901760, %v8983_v30  ;;  %v3790_v7 = vand.u32 4294901760, %v12997_v60 }
 0x14f   :  { %v9000_v21 = vand.u32 4294901760, %v8999_v22 }
 0x153   :  { %3245 = vmatmul.mubr.f32.vlgmr.msra.gmra.mrb[0].mxu1 %v12788_v10  ;;  %8909 = vmatmul.mubr.f32.vlgmr.msra.gmra.mrb[0].mxu0 %v12790_v12  ;;  %v8990_v10 = vand.u32 4294901760, %v8989_v40  ;;  %v9006_v12 = vand.u32 4294901760, %v9005_v23  ;;  %v387_v23 = vcombine.high %v71_v39, %v71_v39 }
 0x154   :  { %3253 = vmatpush1.xpose.msra.mxu1 %v12904_v3  ;;  %8917 = vmatpush1.xpose.msra.mxu0 %v12906_v17 }
 0x155   :  { %3321 = vmatprep.mubr.f32.mxu1 %v3320_v36  ;;  %3337 = vmatprep.subr.mxu1 %v3336_v24  ;;  %v13080_v36 = vld [vmem:[#allocation2 + $0x50] sm:$0xff] }
 0x156   :  { %8985 = vmatprep.mubr.f32.mxu0 %v8984_v41  ;;  %9001 = vmatprep.subr.mxu0 %v9000_v21  ;;  %v59_v41 = vld [vmem:[#allocation5 + $0x40] sm:$0x77]  ;;  %v271_v21 = vrot.slane %v13080_v36, %v12230_v5 }
 0x157   :  { %v375_v40 = vcombine.high %v59_v41, %v59_v41  ;;  %v13126_v42 = vand.u32 4294901760, %v59_v41 }
 0x158   :  { %v13124_v51 = vand.u32 4294901760, %v271_v21 }
 0x15b   :  { %3327 = vmatmul.mubr.f32.vlgmr.msra.gmra.mrb[0].mxu1 %v3326_v44  ;;  %8991 = vmatmul.mubr.f32.vlgmr.msra.gmra.mrb[0].mxu0 %v8990_v10  ;;  %v279_v44 = vcombine.high %v271_v21, %v271_v21  ;;  %v13098_v10 = vand.u32 4294901760, %v375_v40 }
 0x15c   :  { %3343 = vmatpush1.xpose.msra.mxu1 %v3342_v45  ;;  %9007 = vmatpush1.xpose.msra.mxu0 %v9006_v12  ;;  %v13102_v12 = vand.u32 4294901760, %v387_v23 }
 0x15d   :  { %3407 = vmatprep.mubr.f32.mxu1 %v12878_v8  ;;  %3416 = vmatprep.subr.mxu1 %v12890_v56  ;;  %v13025_v56 = vsub.f32 %v159_v33, %v13010_v63  ;;  %v13104_v46 = vand.u32 4294901760, %v279_v44  ;;  %v13112_v33 = vsub.f32 %v375_v40, %v13098_v10 }
 0x15e   :  { %9071 = vmatprep.mubr.f32.mxu0 %v12882_v9  ;;  %9080 = vmatprep.subr.mxu0 %v12898_v19  ;;  %v13033_v19 = vsub.f32 %v58_v52, %v13014_v54 }
 0x15f   :  { %v13117_v52 = vsub.f32 %v279_v44, %v13104_v46 }
 0x163   :  { %3409 = vmatmul.mubr.f32.vlgmr.msra.gmra.mrb[0].mxu1 %v12900_v15  ;;  %9073 = vmatmul.mubr.f32.vlgmr.msra.gmra.mrb[0].mxu0 %v12902_v16 }
 0x164   :  { %3419 = vmatpush1.xpose.msra.mxu1 %v12923_v27  ;;  %9083 = vmatpush1.xpose.msra.mxu0 %v12926_v31 }
 0x165   :  { %3484 = vmatprep.mubr.f32.mxu1 %v12887_v11  ;;  %3493 = vmatprep.subr.mxu1 %v12876_v48  ;;  %v9470_v11 = vand.u32 4294901760, %v13008_v2 }
 0x166   :  { %9148 = vmatprep.mubr.f32.mxu0 %v12895_v18  ;;  %9157 = vmatprep.subr.mxu0 %v12880_v49  ;;  %v13028_v18 = vsub.f32 %v261_v53, %v13012_v0  ;;  %v13120_v53 = vsub.f32 %v387_v23, %v13102_v12 }
 0x16b   :  { %3487 = vmatmul.mubr.f32.vlgmr.msra.gmra.mrb[0].mxu1 %v12915_v6  ;;  %9151 = vmatmul.mubr.f32.vlgmr.msra.gmra.mrb[0].mxu0 %v12918_v26  ;;  %v3812_v6 = vand.u32 4294901760, %v13033_v19 }
 0x16c   :  { %3495 = vmatpush1.xpose.msra.mxu1 %v12904_v3  ;;  %9159 = vmatpush1.xpose.msra.mxu0 %v12906_v17 }
 0x16d   :  { %3561 = vmatprep.mubr.f32.mxu1 %v3318_v20  ;;  %3573 = vmatprep.subr.mxu1 %v3334_v61  ;;  %v13036_v20 = vsub.f32 %v70_v50, %v13016_v4  ;;  %v3791_v61 = vsub.f32 %v12997_v60, %v3790_v7  ;;  %v3813_v22 = vsub.f32 %v13033_v19, %v3812_v6 }
 0x16e   :  { %9225 = vmatprep.mubr.f32.mxu0 %v8982_v62  ;;  %9237 = vmatprep.subr.mxu0 %v8998_v25  ;;  %v3796_v62 = vand.u32 4294901760, %v13025_v56  ;;  %v9460_v25 = vand.u32 4294901760, %v13028_v18 }
 0x16f   :  { %v9476_v26 = vand.u32 4294901760, %v13036_v20  ;;  %v3792_v27 = vand.u32 4294901760, %v3791_v61 }
 0x170   :  { %v3797_v28 = vsub.f32 %v13025_v56, %v3796_v62  ;;  %v9461_v30 = vsub.f32 %v13028_v18, %v9460_v25 }
 0x173   :  { %3565 = vmatmul.mubr.f32.vlgmr.msra.gmra.mrb[0].mxu1 %v3324_v14  ;;  %9229 = vmatmul.mubr.f32.vlgmr.msra.gmra.mrb[0].mxu0 %v8988_v34  ;;  %v9477_v14 = vsub.f32 %v13036_v20, %v9476_v26  ;;  %v3798_v34 = vand.u32 4294901760, %v3797_v28  ;;  %v72_v28 = vld [vmem:[#allocation5 + $0xa8] sm:$0x77] }
 0x174   :  { %3577 = vmatpush1.xpose.msra.mxu1 %v3340_v29  ;;  %9241 = vmatpush1.xpose.msra.mxu0 %v9004_v35  ;;  %v3814_v29 = vand.u32 4294901760, %v3813_v22  ;;  %v13078_v35 = vld [vmem:[#allocation2 + $0x20] sm:$0xff]  ;;  %v13238_v23 = vand.u32 4294901760, %v72_v28 }
 0x175   :  { %3641 = vmatprep.mubr.f32.mxu1 %v12878_v8  ;;  %3649 = vmatprep.subr.mxu1 %v12876_v48  ;;  %v3806_v48 = vand.u32 4294901760, %v13000_v43  ;;  %v169_v24 = vrot.slane %v13078_v35, %v12230_v5 }
 0x176   :  { %9305 = vmatprep.mubr.f32.mxu0 %v12882_v9  ;;  %9313 = vmatprep.subr.mxu0 %v12880_v49  ;;  %v9454_v49 = vand.u32 4294901760, %v13005_v1 }
 0x177   :  { %v177_v32 = vcombine.high %v169_v24, %v169_v24  ;;  %v13122_v50 = vand.u32 4294901760, %v169_v24 }
 0x179   :  { %v13100_v45 = vand.u32 4294901760, %v177_v32 }
 0x17b   :  { %3643 = vmatmul.mubr.f32.vlgmr.msra.gmra.mrb[0].mxu1 %v12900_v15  ;;  %9307 = vmatmul.mubr.f32.vlgmr.msra.gmra.mrb[0].mxu0 %v12902_v16  ;;  %v13109_v47 = vsub.f32 %v177_v32, %v13100_v45 }
 0x17c   :  { %3651 = vmatpush1.xpose.msra.mxu1 %v12904_v3  ;;  %9315 = vmatpush1.xpose.msra.mxu0 %v12906_v17  ;;  %v3807_v3 = vsub.f32 %v13000_v43, %v3806_v48  ;;  %v9455_v17 = vsub.f32 %v13005_v1, %v9454_v49 }
 0x17d   :  { %3715 = vmatprep.mubr.f32.mxu1 %v12878_v8  ;;  %3723 = vmatprep.subr.mxu1 %v12986_v37  ;;  %v9471_v8 = vsub.f32 %v13008_v2, %v9470_v11  ;;  %v4262_v57 = vand.u32 4294901760, %v13109_v47 }
 0x17e   :  { %9379 = vmatprep.mubr.f32.mxu0 %v12882_v9  ;;  %9387 = vmatprep.subr.mxu0 %v12990_v38  ;;  %v3808_v9 = vand.u32 4294901760, %v3807_v3  ;;  %v9456_v31 = vand.u32 4294901760, %v9455_v17 }
 0x17f   :  { %v9472_v13 = vand.u32 4294901760, %v9471_v8 }
 0x183   :  { %3717 = vmatmul.mubr.f32.vlgmr.msra.gmra.mrb[0].mxu1 %v12900_v15  ;;  %9381 = vmatmul.mubr.f32.vlgmr.msra.gmra.mrb[0].mxu0 %v12902_v16  ;;  %v9462_v15 = vand.u32 4294901760, %v9461_v30  ;;  %v9478_v16 = vand.u32 4294901760, %v9477_v14  ;;  %v388_v14 = vcombine.high %v72_v28, %v72_v28 }
 0x184   :  { %3725 = vmatpush1.xpose.msra.mxu1 %v13014_v54  ;;  %9389 = vmatpush1.xpose.msra.mxu0 %v13016_v4 }
 0x185   :  { %3793 = vmatprep.mubr.f32.mxu1 %v3792_v27  ;;  %3809 = vmatprep.subr.mxu1 %v3808_v9  ;;  %v264_v27 = vcombine.high %v13080_v36, %v13080_v36 }
 0x186   :  { %9457 = vmatprep.mubr.f32.mxu0 %v9456_v31  ;;  %9473 = vmatprep.subr.mxu0 %v9472_v13  ;;  %v60_v31 = vld [vmem:[#allocation5 + $0x48] sm:$0x77] }
 0x187   :  { %v278_v13 = vrot.slane %v264_v27, %v12230_v5  ;;  %v376_v30 = vcombine.high %v60_v31, %v60_v31  ;;  %v13236_v32 = vand.u32 4294901760, %v60_v31 }
 0x189   :  { %v13234_v40 = vand.u32 4294901760, %v278_v13 }
 0x18b   :  { %3799 = vmatmul.mubr.f32.vlgmr.msra.gmra.mrb[0].mxu1 %v3798_v34  ;;  %9463 = vmatmul.mubr.f32.vlgmr.msra.gmra.mrb[0].mxu0 %v9462_v15  ;;  %v280_v34 = vcombine.high %v278_v13, %v278_v13  ;;  %v13208_v15 = vand.u32 4294901760, %v376_v30 }
 0x18c   :  { %3815 = vmatpush1.xpose.msra.mxu1 %v3814_v29  ;;  %9479 = vmatpush1.xpose.msra.mxu0 %v9478_v16  ;;  %v13212_v16 = vand.u32 4294901760, %v388_v14 }
 0x18d   :  { %3879 = vmatprep.mubr.f32.mxu1 %v12988_v58  ;;  %3888 = vmatprep.subr.mxu1 %v13000_v43  ;;  %v13137_v43 = vsub.f32 %v169_v24, %v13122_v50  ;;  %v13222_v24 = vsub.f32 %v376_v30, %v13208_v15 }
 0x18e   :  { %9543 = vmatprep.mubr.f32.mxu0 %v12992_v59  ;;  %9552 = vmatprep.subr.mxu0 %v13008_v2  ;;  %v13145_v2 = vsub.f32 %v59_v41, %v13126_v42 }
 0x193   :  { %3881 = vmatmul.mubr.f32.vlgmr.msra.gmra.mrb[0].mxu1 %v13010_v63  ;;  %9545 = vmatmul.mubr.f32.vlgmr.msra.gmra.mrb[0].mxu0 %v13012_v0 }
 0x194   :  { %3891 = vmatpush1.xpose.msra.mxu1 %v13033_v19  ;;  %9555 = vmatpush1.xpose.msra.mxu0 %v13036_v20 }
 0x195   :  { %3956 = vmatprep.mubr.f32.mxu1 %v12997_v60  ;;  %3965 = vmatprep.subr.mxu1 %v12986_v37  ;;  %v9942_v60 = vand.u32 4294901760, %v13120_v53 }
 0x196   :  { %9620 = vmatprep.mubr.f32.mxu0 %v13005_v1  ;;  %9629 = vmatprep.subr.mxu0 %v12990_v38  ;;  %v13140_v1 = vsub.f32 %v271_v21, %v13124_v51  ;;  %v13230_v21 = vsub.f32 %v388_v14, %v13212_v16 }
 0x19b   :  { %3959 = vmatmul.mubr.f32.vlgmr.msra.gmra.mrb[0].mxu1 %v13025_v56  ;;  %9623 = vmatmul.mubr.f32.vlgmr.msra.gmra.mrb[0].mxu0 %v13028_v18  ;;  %v4284_v56 = vand.u32 4294901760, %v13145_v2 }
 0x19c   :  { %3967 = vmatpush1.xpose.msra.mxu1 %v13014_v54  ;;  %9631 = vmatpush1.xpose.msra.mxu0 %v13016_v4 }
 0x19d   :  { %4033 = vmatprep.mubr.f32.mxu1 %v3790_v7  ;;  %4045 = vmatprep.subr.mxu1 %v3806_v48  ;;  %v13148_v7 = vsub.f32 %v71_v39, %v13128_v55  ;;  %v4263_v48 = vsub.f32 %v13109_v47, %v4262_v57  ;;  %v4285_v8 = vsub.f32 %v13145_v2, %v4284_v56 }
 0x19e   :  { %9697 = vmatprep.mubr.f32.mxu0 %v9454_v49  ;;  %9709 = vmatprep.subr.mxu0 %v9470_v11  ;;  %v4268_v49 = vand.u32 4294901760, %v13137_v43  ;;  %v9932_v11 = vand.u32 4294901760, %v13140_v1 }
 0x19f   :  { %v9948_v18 = vand.u32 4294901760, %v13148_v7  ;;  %v4264_v19 = vand.u32 4294901760, %v4263_v48 }
 0x1a0   :  { %v4269_v3 = vsub.f32 %v13137_v43, %v4268_v49  ;;  %v9933_v17 = vsub.f32 %v13140_v1, %v9932_v11 }
 0x1a3   :  { %4037 = vmatmul.mubr.f32.vlgmr.msra.gmra.mrb[0].mxu1 %v3796_v62  ;;  %9701 = vmatmul.mubr.f32.vlgmr.msra.gmra.mrb[0].mxu0 %v9460_v25  ;;  %v9949_v62 = vsub.f32 %v13148_v7, %v9948_v18  ;;  %v4270_v25 = vand.u32 4294901760, %v4269_v3  ;;  %v73_v3 = vld [vmem:[#allocation5 + $0xb0] sm:$0x77] }
 0x1a4   :  { %4049 = vmatpush1.xpose.msra.mxu1 %v3812_v6  ;;  %9713 = vmatpush1.xpose.msra.mxu0 %v9476_v26  ;;  %v4286_v6 = vand.u32 4294901760, %v4285_v8  ;;  %v162_v26 = vcombine.high %v13078_v35, %v13078_v35  ;;  %v13214_v35 = vand.u32 4294901760, %v280_v34  ;;  %v13350_v14 = vand.u32 4294901760, %v73_v3 }
 0x1a5   :  { %4113 = vmatprep.mubr.f32.mxu1 %v12988_v58  ;;  %4121 = vmatprep.subr.mxu1 %v12986_v37  ;;  %v4278_v37 = vand.u32 4294901760, %v13112_v33 }
 0x1a6   :  { %9777 = vmatprep.mubr.f32.mxu0 %v12992_v59  ;;  %9785 = vmatprep.subr.mxu0 %v12990_v38  ;;  %v9926_v38 = vand.u32 4294901760, %v13117_v52  ;;  %v176_v9 = vrot.slane %v162_v26, %v12230_v5  ;;  %v13227_v41 = vsub.f32 %v280_v34, %v13214_v35 }
 0x1a8   :  { %v178_v22 = vcombine.high %v176_v9, %v176_v9  ;;  %v13232_v39 = vand.u32 4294901760, %v176_v9 }
 0x1aa   :  { %v13210_v29 = vand.u32 4294901760, %v178_v22 }
 0x1ab   :  { %4115 = vmatmul.mubr.f32.vlgmr.msra.gmra.mrb[0].mxu1 %v13010_v63  ;;  %9779 = vmatmul.mubr.f32.vlgmr.msra.gmra.mrb[0].mxu0 %v13012_v0 }
 0x1ac   :  { %4123 = vmatpush1.xpose.msra.mxu1 %v13014_v54  ;;  %9787 = vmatpush1.xpose.msra.mxu0 %v13016_v4  ;;  %v4279_v54 = vsub.f32 %v13112_v33, %v4278_v37  ;;  %v9927_v4 = vsub.f32 %v13117_v52, %v9926_v38  ;;  %v13219_v36 = vsub.f32 %v178_v22, %v13210_v29 }
 0x1ad   :  { %4187 = vmatprep.mubr.f32.mxu1 %v12988_v58  ;;  %4195 = vmatprep.subr.mxu1 %v13098_v10  ;;  %v9943_v58 = vsub.f32 %v13120_v53, %v9942_v60 }
 0x1ae   :  { %9851 = vmatprep.mubr.f32.mxu0 %v12992_v59  ;;  %9859 = vmatprep.subr.mxu0 %v13102_v12  ;;  %v4280_v59 = vand.u32 4294901760, %v4279_v54  ;;  %v9928_v20 = vand.u32 4294901760, %v9927_v4  ;;  %v4734_v44 = vand.u32 4294901760, %v13219_v36 }
 0x1af   :  { %v9944_v61 = vand.u32 4294901760, %v9943_v58 }
 0x1b3   :  { %4189 = vmatmul.mubr.f32.vlgmr.msra.gmra.mrb[0].mxu1 %v13010_v63  ;;  %9853 = vmatmul.mubr.f32.vlgmr.msra.gmra.mrb[0].mxu0 %v13012_v0  ;;  %v9934_v63 = vand.u32 4294901760, %v9933_v17  ;;  %v9950_v0 = vand.u32 4294901760, %v9949_v62  ;;  %v389_v62 = vcombine.high %v73_v3, %v73_v3 }
 0x1b4   :  { %4197 = vmatpush1.xpose.msra.mxu1 %v13126_v42  ;;  %9861 = vmatpush1.xpose.msra.mxu0 %v13128_v55 }
 0x1b5   :  { %4265 = vmatprep.mubr.f32.mxu1 %v4264_v19  ;;  %4281 = vmatprep.subr.mxu1 %v4280_v59  ;;  %v13302_v19 = vld [vmem:[#allocation2 + $0x58] sm:$0x3f] }
 0x1b6   :  { %9929 = vmatprep.mubr.f32.mxu0 %v9928_v20  ;;  %9945 = vmatprep.subr.mxu0 %v9944_v61  ;;  %v61_v20 = vld [vmem:[#allocation5 + $0x50] sm:$0x77]  ;;  %v288_v61 = vrot.slane %v13302_v19, %v12230_v5 }
 0x1b7   :  { %v377_v17 = vcombine.high %v61_v20, %v61_v20  ;;  %v13348_v22 = vand.u32 4294901760, %v61_v20 }
 0x1b8   :  { %v13346_v30 = vand.u32 4294901760, %v288_v61 }
 0x1bb   :  { %4271 = vmatmul.mubr.f32.vlgmr.msra.gmra.mrb[0].mxu1 %v4270_v25  ;;  %9935 = vmatmul.mubr.f32.vlgmr.msra.gmra.mrb[0].mxu0 %v9934_v63  ;;  %v296_v25 = vcombine.high %v288_v61, %v288_v61  ;;  %v13320_v63 = vand.u32 4294901760, %v377_v17 }
 0x1bc   :  { %4287 = vmatpush1.xpose.msra.mxu1 %v4286_v6  ;;  %9951 = vmatpush1.xpose.msra.mxu0 %v9950_v0  ;;  %v13324_v0 = vand.u32 4294901760, %v389_v62 }
 0x1bd   :  { %4351 = vmatprep.mubr.f32.mxu1 %v13100_v45  ;;  %4360 = vmatprep.subr.mxu1 %v13112_v33  ;;  %v13247_v33 = vsub.f32 %v176_v9, %v13232_v39  ;;  %v13326_v26 = vand.u32 4294901760, %v296_v25  ;;  %v13334_v9 = vsub.f32 %v377_v17, %v13320_v63 }
 0x1be   :  { %10015 = vmatprep.mubr.f32.mxu0 %v13104_v46  ;;  %10024 = vmatprep.subr.mxu0 %v13120_v53  ;;  %v13255_v53 = vsub.f32 %v60_v31, %v13236_v32 }
 0x1bf   :  { %v13339_v31 = vsub.f32 %v296_v25, %v13326_v26 }
 0x1c3   :  { %4353 = vmatmul.mubr.f32.vlgmr.msra.gmra.mrb[0].mxu1 %v13122_v50  ;;  %10017 = vmatmul.mubr.f32.vlgmr.msra.gmra.mrb[0].mxu0 %v13124_v51 }
 0x1c4   :  { %4363 = vmatpush1.xpose.msra.mxu1 %v13145_v2  ;;  %10027 = vmatpush1.xpose.msra.mxu0 %v13148_v7 }
 0x1c5   :  { %4428 = vmatprep.mubr.f32.mxu1 %v13109_v47  ;;  %4437 = vmatprep.subr.mxu1 %v13098_v10  ;;  %v10414_v47 = vand.u32 4294901760, %v13230_v21 }
 0x1c6   :  { %10092 = vmatprep.mubr.f32.mxu0 %v13117_v52  ;;  %10101 = vmatprep.subr.mxu0 %v13102_v12  ;;  %v13250_v52 = vsub.f32 %v278_v13, %v13234_v40  ;;  %v13342_v13 = vsub.f32 %v389_v62, %v13324_v0 }
 0x1cb   :  { %4431 = vmatmul.mubr.f32.vlgmr.msra.gmra.mrb[0].mxu1 %v13137_v43  ;;  %10095 = vmatmul.mubr.f32.vlgmr.msra.gmra.mrb[0].mxu0 %v13140_v1  ;;  %v4756_v43 = vand.u32 4294901760, %v13255_v53 }
 0x1cc   :  { %4439 = vmatpush1.xpose.msra.mxu1 %v13126_v42  ;;  %10103 = vmatpush1.xpose.msra.mxu0 %v13128_v55 }
 0x1cd   :  { %4505 = vmatprep.mubr.f32.mxu1 %v4262_v57  ;;  %4517 = vmatprep.subr.mxu1 %v4278_v37  ;;  %v13258_v57 = vsub.f32 %v72_v28, %v13238_v23  ;;  %v4735_v37 = vsub.f32 %v13219_v36, %v4734_v44  ;;  %v4757_v58 = vsub.f32 %v13255_v53, %v4756_v43 }
 0x1ce   :  { %10169 = vmatprep.mubr.f32.mxu0 %v9926_v38  ;;  %10181 = vmatprep.subr.mxu0 %v9942_v60  ;;  %v4740_v38 = vand.u32 4294901760, %v13247_v33  ;;  %v10404_v60 = vand.u32 4294901760, %v13250_v52 }
 0x1cf   :  { %v10420_v1 = vand.u32 4294901760, %v13258_v57  ;;  %v4736_v2 = vand.u32 4294901760, %v4735_v37 }
 0x1d0   :  { %v4741_v54 = vsub.f32 %v13247_v33, %v4740_v38  ;;  %v10405_v4 = vsub.f32 %v13250_v52, %v10404_v60 }
 0x1d3   :  { %4509 = vmatmul.mubr.f32.vlgmr.msra.gmra.mrb[0].mxu1 %v4268_v49  ;;  %10173 = vmatmul.mubr.f32.vlgmr.msra.gmra.mrb[0].mxu0 %v9932_v11  ;;  %v10421_v49 = vsub.f32 %v13258_v57, %v10420_v1  ;;  %v4742_v11 = vand.u32 4294901760, %v4741_v54 }
 0x1d4   :  { %4521 = vmatpush1.xpose.msra.mxu1 %v4284_v56  ;;  %10185 = vmatpush1.xpose.msra.mxu0 %v9948_v18  ;;  %v4758_v56 = vand.u32 4294901760, %v4757_v58  ;;  %v13300_v18 = vld [vmem:[#allocation2 + $0x28] sm:$0xff] }
 0x1d5   :  { %4585 = vmatprep.mubr.f32.mxu1 %v13100_v45  ;;  %4593 = vmatprep.subr.mxu1 %v13098_v10  ;;  %v4750_v10 = vand.u32 4294901760, %v13222_v24  ;;  %v186_v59 = vrot.slane %v13300_v18, %v12230_v5 }
 0x1d6   :  { %10249 = vmatprep.mubr.f32.mxu0 %v13104_v46  ;;  %10257 = vmatprep.subr.mxu0 %v13102_v12  ;;  %v10398_v12 = vand.u32 4294901760, %v13227_v41 }
 0x1d7   :  { %v194_v8 = vcombine.high %v186_v59, %v186_v59  ;;  %v13344_v28 = vand.u32 4294901760, %v186_v59 }
 0x1d9   :  { %v13322_v6 = vand.u32 4294901760, %v194_v8 }
 0x1db   :  { %4587 = vmatmul.mubr.f32.vlgmr.msra.gmra.mrb[0].mxu1 %v13122_v50  ;;  %10251 = vmatmul.mubr.f32.vlgmr.msra.gmra.mrb[0].mxu0 %v13124_v51  ;;  %v13331_v27 = vsub.f32 %v194_v8, %v13322_v6 }
 0x1dc   :  { %4595 = vmatpush1.xpose.msra.mxu1 %v13126_v42  ;;  %10259 = vmatpush1.xpose.msra.mxu0 %v13128_v55  ;;  %v4751_v42 = vsub.f32 %v13222_v24, %v4750_v10  ;;  %v10399_v55 = vsub.f32 %v13227_v41, %v10398_v12 }
 0x1dd   :  { %4659 = vmatprep.mubr.f32.mxu1 %v13100_v45  ;;  %4667 = vmatprep.subr.mxu1 %v13208_v15  ;;  %v10415_v45 = vsub.f32 %v13230_v21, %v10414_v47  ;;  %v5206_v34 = vand.u32 4294901760, %v13331_v27 }
 0x1de   :  { %10323 = vmatprep.mubr.f32.mxu0 %v13104_v46  ;;  %10331 = vmatprep.subr.mxu0 %v13212_v16  ;;  %v4752_v46 = vand.u32 4294901760, %v4751_v42  ;;  %v10400_v7 = vand.u32 4294901760, %v10399_v55 }
 0x1df   :  { %v10416_v48 = vand.u32 4294901760, %v10415_v45 }
 0x1e3   :  { %4661 = vmatmul.mubr.f32.vlgmr.msra.gmra.mrb[0].mxu1 %v13122_v50  ;;  %10325 = vmatmul.mubr.f32.vlgmr.msra.gmra.mrb[0].mxu0 %v13124_v51  ;;  %v10406_v50 = vand.u32 4294901760, %v10405_v4  ;;  %v10422_v51 = vand.u32 4294901760, %v10421_v49 }
 0x1e4   :  { %4669 = vmatpush1.xpose.msra.mxu1 %v13236_v32  ;;  %10333 = vmatpush1.xpose.msra.mxu0 %v13238_v23 }
 0x1e5   :  { %4737 = vmatprep.mubr.f32.mxu1 %v4736_v2  ;;  %4753 = vmatprep.subr.mxu1 %v4752_v46  ;;  %v62_v46 = vld [vmem:[#allocation5 + $0x58] sm:$0x77] }
 0x1e6   :  { %10401 = vmatprep.mubr.f32.mxu0 %v10400_v7  ;;  %10417 = vmatprep.subr.mxu0 %v10416_v48  ;;  %v281_v7 = vcombine.high %v13302_v19, %v13302_v19  ;;  %v378_v48 = vcombine.high %v62_v46, %v62_v46 }
 0x1e8   :  { %v295_v4 = vrot.slane %v281_v7, %v12230_v5  ;;  %v13430_v58 = vand.u32 4294901760, %v378_v48 }
 0x1eb   :  { %4743 = vmatmul.mubr.f32.vlgmr.msra.gmra.mrb[0].mxu1 %v4742_v11  ;;  %10407 = vmatmul.mubr.f32.vlgmr.msra.gmra.mrb[0].mxu0 %v10406_v50  ;;  %v74_v11 = vld [vmem:[#allocation5 + $0xb8] sm:$0x7]  ;;  %v414_v50 = vsel %vm413_vm0, %v295_v4, 0 }
 0x1ec   :  { %4759 = vmatpush1.xpose.msra.mxu1 %v4758_v56  ;;  %10423 = vmatpush1.xpose.msra.mxu0 %v10422_v51  ;;  %v416_v56 = vsel %vm413_vm0, %v74_v11, 0 }
 0x1ed   :  { %4823 = vmatprep.mubr.f32.mxu1 %v13210_v29  ;;  %4832 = vmatprep.subr.mxu1 %v13222_v24  ;;  %v13359_v24 = vsub.f32 %v186_v59, %v13344_v28  ;;  %v13448_v59 = vand.u32 4294901760, %v62_v46 }
 0x1ee   :  { %10487 = vmatprep.mubr.f32.mxu0 %v13214_v35  ;;  %10496 = vmatprep.subr.mxu0 %v13230_v21  ;;  %v13367_v21 = vsub.f32 %v61_v20, %v13348_v22  ;;  %v13450_v20 = vand.u32 4294901760, %v416_v56 }
 0x1ef   :  { %v5699_v25 = vsub.f32 %v62_v46, %v13448_v59 }
 0x1f0   :  { %v11352_v62 = vsub.f32 %v416_v56, %v13450_v20 }
 0x1f3   :  { %4825 = vmatmul.mubr.f32.vlgmr.msra.gmra.mrb[0].mxu1 %v13232_v39  ;;  %10489 = vmatmul.mubr.f32.vlgmr.msra.gmra.mrb[0].mxu0 %v13234_v40 }
 0x1f4   :  { %4835 = vmatpush1.xpose.msra.mxu1 %v13255_v53  ;;  %10499 = vmatpush1.xpose.msra.mxu0 %v13258_v57 }
 0x1f5   :  { %4900 = vmatprep.mubr.f32.mxu1 %v13219_v36  ;;  %4909 = vmatprep.subr.mxu1 %v13208_v15  ;;  %v10886_v36 = vand.u32 4294901760, %v13342_v13 }
 0x1f6   :  { %10564 = vmatprep.mubr.f32.mxu0 %v13227_v41  ;;  %10573 = vmatprep.subr.mxu0 %v13212_v16  ;;  %v13362_v41 = vsub.f32 %v288_v61, %v13346_v30 }
 0x1fb   :  { %4903 = vmatmul.mubr.f32.vlgmr.msra.gmra.mrb[0].mxu1 %v13247_v33  ;;  %10567 = vmatmul.mubr.f32.vlgmr.msra.gmra.mrb[0].mxu0 %v13250_v52  ;;  %v5228_v33 = vand.u32 4294901760, %v13367_v21 }
 0x1fc   :  { %4911 = vmatpush1.xpose.msra.mxu1 %v13236_v32  ;;  %10575 = vmatpush1.xpose.msra.mxu0 %v13238_v23 }
 0x1fd   :  { %4977 = vmatprep.mubr.f32.mxu1 %v4734_v44  ;;  %4989 = vmatprep.subr.mxu1 %v4750_v10  ;;  %v13370_v44 = vsub.f32 %v73_v3, %v13350_v14  ;;  %v5207_v10 = vsub.f32 %v13331_v27, %v5206_v34  ;;  %v5229_v45 = vsub.f32 %v13367_v21, %v5228_v33 }
 0x1fe   :  { %10641 = vmatprep.mubr.f32.mxu0 %v10398_v12  ;;  %10653 = vmatprep.subr.mxu0 %v10414_v47  ;;  %v5212_v12 = vand.u32 4294901760, %v13359_v24  ;;  %v10876_v47 = vand.u32 4294901760, %v13362_v41 }
 0x1ff   :  { %v10892_v52 = vand.u32 4294901760, %v13370_v44  ;;  %v5208_v53 = vand.u32 4294901760, %v5207_v10 }
 0x200   :  { %v5213_v42 = vsub.f32 %v13359_v24, %v5212_v12  ;;  %v10877_v55 = vsub.f32 %v13362_v41, %v10876_v47 }
 0x203   :  { %4981 = vmatmul.mubr.f32.vlgmr.msra.gmra.mrb[0].mxu1 %v4740_v38  ;;  %10645 = vmatmul.mubr.f32.vlgmr.msra.gmra.mrb[0].mxu0 %v10404_v60  ;;  %v10893_v38 = vsub.f32 %v13370_v44, %v10892_v52  ;;  %v5214_v60 = vand.u32 4294901760, %v5213_v42 }
 0x204   :  { %4993 = vmatpush1.xpose.msra.mxu1 %v4756_v43  ;;  %10657 = vmatpush1.xpose.msra.mxu0 %v10420_v1  ;;  %v5230_v43 = vand.u32 4294901760, %v5229_v45  ;;  %v179_v1 = vcombine.high %v13300_v18, %v13300_v18  ;;  %v13444_v18 = vand.u32 4294901760, %v414_v50 }
 0x205   :  { %5057 = vmatprep.mubr.f32.mxu1 %v13210_v29  ;;  %5065 = vmatprep.subr.mxu1 %v13208_v15  ;;  %v5222_v15 = vand.u32 4294901760, %v13334_v9 }
 0x206   :  { %10721 = vmatprep.mubr.f32.mxu0 %v13214_v35  ;;  %10729 = vmatprep.subr.mxu0 %v13212_v16  ;;  %v10870_v16 = vand.u32 4294901760, %v13339_v31  ;;  %v193_v2 = vrot.slane %v179_v1, %v12230_v5  ;;  %v13440_v5 = vsub.f32 %v378_v48, %v13430_v58  ;;  %v11341_v17 = vsub.f32 %v414_v50, %v13444_v18 }
 0x208   :  { %v195_v54 = vcombine.high %v193_v2, %v193_v2  ;;  %v13446_v19 = vand.u32 4294901760, %v193_v2  ;;  %v5694_v3 = vand.u32 4294901760, %v13440_v5 }
 0x20a   :  { %v13432_v49 = vand.u32 4294901760, %v195_v54  ;;  %v5683_v8 = vsub.f32 %v193_v2, %v13446_v19 }
 0x20b   :  { %5059 = vmatmul.mubr.f32.vlgmr.msra.gmra.mrb[0].mxu1 %v13232_v39  ;;  %10723 = vmatmul.mubr.f32.vlgmr.msra.gmra.mrb[0].mxu0 %v13234_v40 }
 0x20c   :  { %5067 = vmatpush1.xpose.msra.mxu1 %v13236_v32  ;;  %10731 = vmatpush1.xpose.msra.mxu0 %v13238_v23  ;;  %v5223_v32 = vsub.f32 %v13334_v9, %v5222_v15  ;;  %v10871_v23 = vsub.f32 %v13339_v31, %v10870_v16  ;;  %v13437_v51 = vsub.f32 %v195_v54, %v13432_v49 }
 0x20d   :  { %5131 = vmatprep.mubr.f32.mxu1 %v13210_v29  ;;  %5139 = vmatprep.subr.mxu1 %v13320_v63  ;;  %v10887_v29 = vsub.f32 %v13342_v13, %v10886_v36 }
 0x20e   :  { %10795 = vmatprep.mubr.f32.mxu0 %v13214_v35  ;;  %10803 = vmatprep.subr.mxu0 %v13324_v0  ;;  %v5224_v35 = vand.u32 4294901760, %v5223_v32  ;;  %v10872_v57 = vand.u32 4294901760, %v10871_v23  ;;  %v5678_v61 = vand.u32 4294901760, %v13437_v51 }
 0x20f   :  { %v10888_v37 = vand.u32 4294901760, %v10887_v29 }
 0x213   :  { %5133 = vmatmul.mubr.f32.vlgmr.msra.gmra.mrb[0].mxu1 %v13232_v39  ;;  %10797 = vmatmul.mubr.f32.vlgmr.msra.gmra.mrb[0].mxu0 %v13234_v40  ;;  %v10878_v39 = vand.u32 4294901760, %v10877_v55  ;;  %v10894_v40 = vand.u32 4294901760, %v10893_v38 }
 0x214   :  { %5141 = vmatpush1.xpose.msra.mxu1 %v13348_v22  ;;  %10805 = vmatpush1.xpose.msra.mxu0 %v13350_v14 }
 0x215   :  { %5209 = vmatprep.mubr.f32.mxu1 %v5208_v53  ;;  %5225 = vmatprep.subr.mxu1 %v5224_v35 }
 0x216   :  { %10873 = vmatprep.mubr.f32.mxu0 %v10872_v57  ;;  %10889 = vmatprep.subr.mxu0 %v10888_v37 }
 0x21b   :  { %5215 = vmatmul.mubr.f32.vlgmr.msra.gmra.mrb[0].mxu1 %v5214_v60  ;;  %10879 = vmatmul.mubr.f32.vlgmr.msra.gmra.mrb[0].mxu0 %v10878_v39 }
 0x21c   :  { %5231 = vmatpush1.xpose.msra.mxu1 %v5230_v43  ;;  %10895 = vmatpush1.xpose.msra.mxu0 %v10894_v40 }
 0x21d   :  { %5295 = vmatprep.mubr.f32.mxu1 %v13322_v6  ;;  %5304 = vmatprep.subr.mxu1 %v13334_v9  ;;  %v5684_v9 = vand.u32 4294901760, %v5683_v8 }
 0x21e   :  { %10959 = vmatprep.mubr.f32.mxu0 %v13326_v26  ;;  %10968 = vmatprep.subr.mxu0 %v13342_v13  ;;  %v5700_v13 = vand.u32 4294901760, %v5699_v25 }
 0x223   :  { %5297 = vmatmul.mubr.f32.vlgmr.msra.gmra.mrb[0].mxu1 %v13344_v28  ;;  %10961 = vmatmul.mubr.f32.vlgmr.msra.gmra.mrb[0].mxu0 %v13346_v30 }
 0x224   :  { %5307 = vmatpush1.xpose.msra.mxu1 %v13367_v21  ;;  %10971 = vmatpush1.xpose.msra.mxu0 %v13370_v44 }
 0x225   :  { %5372 = vmatprep.mubr.f32.mxu1 %v13331_v27  ;;  %5381 = vmatprep.subr.mxu1 %v13320_v63  ;;  %v12183_v27 = vmov 0.0  }
 0x226   :  { %11036 = vmatprep.mubr.f32.mxu0 %v13339_v31  ;;  %11045 = vmatprep.subr.mxu0 %v13324_v0  ;;  %v11342_v31 = vand.u32 4294901760, %v11341_v17 }
 0x22b   :  { %5375 = vmatmul.mubr.f32.vlgmr.msra.gmra.mrb[0].mxu1 %v13359_v24  ;;  %11039 = vmatmul.mubr.f32.vlgmr.msra.gmra.mrb[0].mxu0 %v13362_v41 }
 0x22c   :  { %5383 = vmatpush1.xpose.msra.mxu1 %v13348_v22  ;;  %11047 = vmatpush1.xpose.msra.mxu0 %v13350_v14 }
 0x22d   :  { %5449 = vmatprep.mubr.f32.mxu1 %v5206_v34  ;;  %5461 = vmatprep.subr.mxu1 %v5222_v15  ;;  %v11343_v15 = vsub.f32 %v11341_v17, %v11342_v31 }
 0x22e   :  { %11113 = vmatprep.mubr.f32.mxu0 %v10870_v16  ;;  %11125 = vmatprep.subr.mxu0 %v10886_v36  ;;  %v5701_v16 = vsub.f32 %v5699_v25, %v5700_v13 }
 0x22f   :  { %v11344_v24 = vand.u32 4294901760, %v11343_v15 }
 0x230   :  { %v5702_v41 = vand.u32 4294901760, %v5701_v16 }
 0x233   :  { %5453 = vmatmul.mubr.f32.vlgmr.msra.gmra.mrb[0].mxu1 %v5212_v12  ;;  %11117 = vmatmul.mubr.f32.vlgmr.msra.gmra.mrb[0].mxu0 %v10876_v47 }
 0x234   :  { %5465 = vmatpush1.xpose.msra.mxu1 %v5228_v33  ;;  %11129 = vmatpush1.xpose.msra.mxu0 %v10892_v52 }
 0x235   :  { %5529 = vmatprep.mubr.f32.mxu1 %v13322_v6  ;;  %5537 = vmatprep.subr.mxu1 %v13320_v63  ;;  %v5679_v63 = vsub.f32 %v13437_v51, %v5678_v61 }
 0x236   :  { %11193 = vmatprep.mubr.f32.mxu0 %v13326_v26  ;;  %11201 = vmatprep.subr.mxu0 %v13324_v0  ;;  %v5695_v0 = vsub.f32 %v13440_v5, %v5694_v3 }
 0x238   :  { %v5696_v34 = vand.u32 4294901760, %v5695_v0 }
 0x23b   :  { %5531 = vmatmul.mubr.f32.vlgmr.msra.gmra.mrb[0].mxu1 %v13344_v28  ;;  %11195 = vmatmul.mubr.f32.vlgmr.msra.gmra.mrb[0].mxu0 %v13346_v30 }
 0x23c   :  { %5539 = vmatpush1.xpose.msra.mxu1 %v13348_v22  ;;  %11203 = vmatpush1.xpose.msra.mxu0 %v13350_v14  ;;  %v11353_v22 = vand.u32 4294901760, %v11352_v62  ;;  %v5680_v14 = vand.u32 4294901760, %v5679_v63 }
 0x23d   :  { %5603 = vmatprep.mubr.f32.mxu1 %v13322_v6  ;;  %5611 = vmatprep.subr.mxu1 %v13430_v58  ;;  %v5685_v6 = vsub.f32 %v5683_v8, %v5684_v9 }
 0x23e   :  { %11267 = vmatprep.mubr.f32.mxu0 %v13326_v26  ;;  %11751 = vmatprep.subr.mxu0 %v12183_v27  ;;  %v11354_v26 = vsub.f32 %v11352_v62, %v11353_v22 }
 0x23f   :  { %v5686_v36 = vand.u32 4294901760, %v5685_v6 }
 0x243   :  { %5605 = vmatmul.mubr.f32.vlgmr.msra.gmra.mrb[0].mxu1 %v13344_v28  ;;  %11269 = vmatmul.mubr.f32.vlgmr.msra.gmra.mrb[0].mxu0 %v13346_v30  ;;  %v11355_v28 = vand.u32 4294901760, %v11354_v26  ;;  %v11738_v30 = vld [vmem:[%s13511_s2] ss:$0 sm:$0xff] }
 0x244   :  { %5613 = vmatpush1.xpose.msra.mxu1 %v13448_v59  ;;  %11752 = vmatpush3.xpose.msra.mxu0 %v13450_v20 }
 0x245   :  { %5681 = vmatprep.mubr.f32.mxu1 %v5680_v14  ;;  %5697 = vmatprep.subr.mxu1 %v5696_v34 }
 0x246   :  { %11753 = vmatprep.mubr.msk.f32.mxu0 %vm12184_vm1, %v12183_v27  ;;  %11756 = vmatprep.subr.mxu0 %v12183_v27 }
 0x24b   :  { %5687 = vmatmul.mubr.f32.vlgmr.msra.gmra.mrb[0].mxu1 %v5686_v36  ;;  %11754 = vmatmul.mubr.f32.vlgmr.msra.gmra.mrb[0].mxu0 %v11344_v24 }
 0x24c   :  { %5703 = vmatpush1.xpose.msra.mxu1 %v5702_v41  ;;  %11757 = vmatpush3.xpose.msra.mxu0 %v11355_v28 }
 0x24d   :  { %5767 = vmatprep.mubr.f32.mxu1 %v13432_v49  ;;  %5776 = vmatprep.subr.mxu1 %v13440_v5 }
 0x24e   :  { %11758 = vmatprep.mubr.msk.f32.mxu0 %vm12184_vm1, %v12183_v27  ;;  %11761 = vmatprep.subr.mxu0 %v12183_v27 }
 0x253   :  { %5769 = vmatmul.mubr.f32.vlgmr.msra.gmra.mrb[0].mxu1 %v13446_v19  ;;  %11759 = vmatmul.mubr.f32.vlgmr.msra.gmra.mrb[0].mxu0 %v13444_v18 }
 0x254   :  { %5779 = vmatpush1.xpose.msra.mxu1 %v5699_v25  ;;  %11762 = vmatpush3.xpose.msra.mxu0 %v11352_v62 }
 0x255   :  { %5844 = vmatprep.mubr.f32.mxu1 %v13437_v51  ;;  %5853 = vmatprep.subr.mxu1 %v13430_v58 }
 0x256   :  { %11763 = vmatprep.mubr.msk.f32.mxu0 %vm12184_vm1, %v12183_v27  ;;  %11766 = vmatprep.subr.mxu0 %v12183_v27 }
 0x25b   :  { %5847 = vmatmul.mubr.f32.vlgmr.msra.gmra.mrb[0].mxu1 %v5683_v8  ;;  %11764 = vmatmul.mubr.f32.vlgmr.msra.gmra.mrb[0].mxu0 %v11341_v17 }
 0x25c   :  { %5855 = vmatpush1.xpose.msra.mxu1 %v13448_v59  ;;  %11767 = vmatpush3.xpose.msra.mxu0 %v13450_v20 }
 0x25d   :  { %5921 = vmatprep.mubr.f32.mxu1 %v5678_v61  ;;  %5933 = vmatprep.subr.mxu1 %v5694_v3 }
 0x25e   :  { %11768 = vmatprep.mubr.msk.f32.mxu0 %vm12184_vm1, %v12183_v27  ;;  %11771 = vmatprep.subr.mxu0 %v12183_v27 }
 0x263   :  { %5925 = vmatmul.mubr.f32.vlgmr.msra.gmra.mrb[0].mxu1 %v5684_v9  ;;  %11769 = vmatmul.mubr.f32.vlgmr.msra.gmra.mrb[0].mxu0 %v11342_v31 }
 0x264   :  { %5937 = vmatpush1.xpose.msra.mxu1 %v5700_v13  ;;  %11772 = vmatpush3.xpose.msra.mxu0 %v11353_v22 }
 0x265   :  { %6001 = vmatprep.mubr.f32.mxu1 %v13432_v49  ;;  %6009 = vmatprep.subr.mxu1 %v13430_v58 }
 0x266   :  { %11773 = vmatprep.mubr.msk.f32.mxu0 %vm12184_vm1, %v12183_v27  ;;  %11776 = vmatprep.subr.mxu0 %v12183_v27 }
 0x26b   :  { %6003 = vmatmul.mubr.f32.vlgmr.msra.gmra.mrb[0].mxu1 %v13446_v19  ;;  %11774 = vmatmul.mubr.f32.vlgmr.msra.gmra.mrb[0].mxu0 %v13444_v18 }
 0x26c   :  { %6011 = vmatpush1.xpose.msra.mxu1 %v13448_v59  ;;  %11777 = vmatpush3.xpose.msra.mxu0 %v13450_v20 }
 0x26d   :  { %6075 = vmatprep.mubr.f32.mxu1 %v13432_v49  ;;  %11778 = vmatprep.mubr.msk.f32.mxu0 %vm12184_vm1, %v12183_v27 }
 0x273   :  { %6077 = vmatmul.mubr.f32.vlgmr.msra.gmra.mrb[0].mxu1 %v13446_v19  ;;  %11779 = vmatmul.mubr.f32.vlgmr.msra.gmra.mrb[0].mxu0 %v13444_v18 }
 0x346   :  { %v6078_v21 = vpop.f32.mrb[0].mxu1  ;;  %v11716_v44 = vpop.f32.mrb[0].mxu0 }
 0x347   :  { %v11781_v10 = vadd.f32 %v11738_v30, %v6078_v21  ;;  %v6080_v32 = vpop.f32.mrb[1].mxu1  ;;  %v11780_v23 = vpop.f32.mrb[1].mxu0 }
 0x349   :  { %v11782_v29 = vadd.f32 %v11781_v10, %v11716_v44 }
 0x34b   :  { %11721 = vst.msk [vmem:[#allocation7] sm:$0x3] %vm11720_vm2, %v11782_v29 }
 0x34c   :  { %12163 = shalt.err (!%p12160_p6)
}
 0x34d   :  { %s12164_s13 = scalar_lea.hbm %s13512_s3, 32 }
 0x34e   :  { %p12165_p7 = scmp.ne.s32.totalorder %s13512_s3, %s12164_s13  ;;  %p12168_p8 = scmp.lt.u32.totalorder %s12164_s13, %s13512_s3 }
 0x350   :  { %p12170_p9 = pnand %p12168_p8, %p12165_p7 }
 0x352   :  { %12173 = shalt.err (!%p12170_p9)
}
 0x353   :  { %11731 = dma.vmem_to_hbm [thread:$0]  %s11729_s10, 32, %s13512_s3, [#allocation4]  }
 0x354   :  { %12178 = dma.done.wait [#allocation4], 32  }
 0x355   :  { %12179 = vsyncadd [#allocation4], 4294967264 }
 0x356   :  { %11735 = vsyncpa [#allocation3], 1 }
 0x357   :  { %11736 = vsyncpa [#allocation6], 1 }
 0x358   :  { %11737 = vsyncpa [#allocation4], 1 }

</bundles_post_ra>
